<compile_context>
chip_gen: v7x
topology: tpu7x:2x2x1
jax: 0.10.0
libtpu: 0.0.40
codegen_flags: <defaults>
</compile_context>

<pallas_src>
import functools

import jax
import jax.numpy as jnp
from jax import lax
from jax.experimental import pallas as pl
from jax.experimental.pallas import tpu as pltpu

EPS = 1e-6      # VN epsilon (added to the norm and to ||d||^2)
BN_EPS = 1e-5   # nn.BatchNorm1d/2d default eps
_HIGH = lax.Precision.HIGHEST


def _vn_stats_kernel(x_ref, wf_ref, stats_ref):
    # x_ref:     [C_in, 3, tile_n]   (one batch sample, one N tile)
    # wf_ref:    [C_out, C_in]
    # stats_ref: [C_out, 2]  -> col 0: sum(norm), col 1: sum(norm^2) over this tile
    x = x_ref[...]
    wf = wf_ref[...]
    nrm2 = None
    for k in range(3):
        pk = jnp.dot(wf, x[:, k, :], preferred_element_type=jnp.float32,
                     precision=_HIGH)
        nrm2 = pk * pk if nrm2 is None else nrm2 + pk * pk
    norm = jnp.sqrt(nrm2) + EPS                                  # [C_out, tile_n]
    stats_ref[:, 0:1] = jnp.sum(norm, axis=1, keepdims=True)
    stats_ref[:, 1:2] = jnp.sum(norm * norm, axis=1, keepdims=True)


def _vn_apply_kernel(x_ref, wf_ref, wd_ref, a_ref, b_ref, o_ref, *, negative_slope):
    # x_ref: [C_in, 3, tile_n]   wf_ref: [C_out, C_in]   wd_ref: [C_dir, C_in]
    # a_ref/b_ref: [C_out, 1]  (fused BN affine:  scale = a + b / norm)
    # o_ref: [C_out, 3, tile_n]  (PyTorch layout slab)
    x = x_ref[...]
    wf = wf_ref[...]
    wd = wd_ref[...]

    p = []
    d = []
    for k in range(3):
        xk = x[:, k, :]
        p.append(jnp.dot(wf, xk, preferred_element_type=jnp.float32, precision=_HIGH))
        d.append(jnp.dot(wd, xk, preferred_element_type=jnp.float32, precision=_HIGH))

    nrm2 = p[0] * p[0] + p[1] * p[1] + p[2] * p[2]
    inv_norm = 1.0 / (jnp.sqrt(nrm2) + EPS)
    scale = a_ref[...] + b_ref[...] * inv_norm                   # [C_out, tile_n]

    q = [pk * scale for pk in p]                                 # batch-normed p
    dot_pd = q[0] * d[0] + q[1] * d[1] + q[2] * d[2]
    dnorm2 = d[0] * d[0] + d[1] * d[1] + d[2] * d[2]
    coef = dot_pd / (dnorm2 + EPS)
    pos = dot_pd >= 0.0
    sl = negative_slope

    for k in range(3):
        neg_branch = q[k] - coef * d[k]
        out_k = sl * q[k] + (1.0 - sl) * jnp.where(pos, q[k], neg_branch)
        o_ref[:, k:k + 1, :] = out_k[:, None, :].astype(o_ref.dtype)


def _pick_tile(n):
    # Largest lane-aligned tile that divides N (bigger tiles amortise per-step
    # pipeline overhead); fall back to the whole axis for small / odd N.
    for cand in (2048, 1024, 512, 256, 128):
        if n % cand == 0:
            return cand
    return n


@functools.partial(jax.jit, static_argnames=("negative_slope",))
def vn_linear_leaky_relu(x, w_feat, w_dir, gamma, beta, negative_slope=0.2):
    """x: [B, C_in, 3, *spatial] (PyTorch layout).  Returns [B, C_out, 3, *spatial]."""
    B, C_in, three = x.shape[:3]
    assert three == 3, "vector-neuron axis must have size 3"
    spatial = x.shape[3:]
    N = 1
    for s in spatial:
        N *= s
    C_out = w_feat.shape[0]
    C_dir = w_dir.shape[0]          # C_out, or 1 when share_nonlinearity=True

    f32 = jnp.float32
    x4 = x.reshape(B, C_in, 3, N)                    # free reshape, no data movement
    wf = w_feat.astype(f32)
    wd = w_dir.astype(f32)

    tile_n = _pick_tile(N)
    n_tiles = N // tile_n
    cparams = pltpu.CompilerParams(
        dimension_semantics=("parallel", "parallel"),
        vmem_limit_bytes=64 * 1024 * 1024)

    # ---- Pass 1: per-(b, n-tile) partial sums of norm / norm^2 -------------------
    stats = pl.pallas_call(
        _vn_stats_kernel,
        out_shape=jax.ShapeDtypeStruct((B, n_tiles, C_out, 2), f32),
        grid=(B, n_tiles),
        in_specs=[
            pl.BlockSpec((None, C_in, 3, tile_n), lambda b, t: (b, 0, 0, t)),
            pl.BlockSpec((C_out, C_in), lambda b, t: (0, 0)),
        ],
        out_specs=pl.BlockSpec((None, None, C_out, 2), lambda b, t: (b, t, 0, 0)),
        compiler_params=cparams,
    )(x4, wf)

    totals = jnp.sum(stats, axis=(0, 1))             # [C_out, 2]
    count = float(B * N)
    mean = totals[:, 0] / count
    var = jnp.maximum(totals[:, 1] / count - mean * mean, 0.0)   # biased variance
    a_aff = gamma.astype(f32) * lax.rsqrt(var + BN_EPS)
    b_aff = beta.astype(f32) - a_aff * mean
    a_col = a_aff.reshape(C_out, 1)
    b_col = b_aff.reshape(C_out, 1)

    # ---- Pass 2: recompute p, d; apply fused BN + VN leaky ReLU -------------------
    out4 = pl.pallas_call(
        functools.partial(_vn_apply_kernel, negative_slope=float(negative_slope)),
        out_shape=jax.ShapeDtypeStruct((B, C_out, 3, N), x.dtype),
        grid=(B, n_tiles),
        in_specs=[
            pl.BlockSpec((None, C_in, 3, tile_n), lambda b, t: (b, 0, 0, t)),
            pl.BlockSpec((C_out, C_in), lambda b, t: (0, 0)),
            pl.BlockSpec((C_dir, C_in), lambda b, t: (0, 0)),
            pl.BlockSpec((C_out, 1), lambda b, t: (0, 0)),
            pl.BlockSpec((C_out, 1), lambda b, t: (0, 0)),
        ],
        out_specs=pl.BlockSpec((None, C_out, 3, tile_n), lambda b, t: (b, 0, 0, t)),
        compiler_params=cparams,
    )(x4, wf, wd, a_col, b_col)

    return out4.reshape((B, C_out, 3) + spatial)


def _reference(x, w_feat, w_dir, gamma, beta, negative_slope=0.2):
    # Pure-JAX mirror of the PyTorch forward (training-mode BN).
    xt = jnp.swapaxes(x, 1, -1)
    p = jnp.swapaxes(jnp.matmul(xt, w_feat.T, precision=_HIGH), 1, -1)
    d = jnp.swapaxes(jnp.matmul(xt, w_dir.T, precision=_HIGH), 1, -1)

    norm = jnp.linalg.norm(p, axis=2) + EPS                     # [B, C_out, *spatial]
    red = (0,) + tuple(range(2, norm.ndim))
    mean = jnp.mean(norm, axis=red, keepdims=True)
    var = jnp.mean((norm - mean) ** 2, axis=red, keepdims=True)
    gshape = (1, -1) + (1,) * (norm.ndim - 2)
    norm_bn = (norm - mean) / jnp.sqrt(var + BN_EPS) * gamma.reshape(gshape) \
        + beta.reshape(gshape)
    p = p / norm[:, :, None] * norm_bn[:, :, None]

    dotprod = jnp.sum(p * d, axis=2, keepdims=True)
    mask = (dotprod >= 0).astype(x.dtype)
    d_norm_sq = jnp.sum(d * d, axis=2, keepdims=True)
    sl = negative_slope
    return sl * p + (1 - sl) * (mask * p +
                                (1 - mask) * (p - dotprod / (d_norm_sq + EPS) * d))


if __name__ == "__main__":
    key = jax.random.PRNGKey(0)
    kx, kwf, kwd, kg, kb = jax.random.split(key, 5)

    # dim=5-style input: [B, C_in, 3, N1, N2]  (wrapper flattens the spatial dims)
    B, C_in, C_out, N1, N2 = 2, 4, 8, 8, 8
    x = jax.random.normal(kx, (B, C_in, 3, N1, N2), dtype=jnp.float32)
    w_feat = jax.random.normal(kwf, (C_out, C_in), dtype=jnp.float32) / jnp.sqrt(C_in)
    w_dir = jax.random.normal(kwd, (C_out, C_in), dtype=jnp.float32) / jnp.sqrt(C_in)
    gamma = 1.0 + 0.1 * jax.random.normal(kg, (C_out,), dtype=jnp.float32)
    beta = 0.1 * jax.random.normal(kb, (C_out,), dtype=jnp.float32)

    out = vn_linear_leaky_relu(x, w_feat, w_dir, gamma, beta)
    out = jax.block_until_ready(out)

    ref = _reference(x, w_feat, w_dir, gamma, beta)
    assert out.shape == (B, C_out, 3, N1, N2) and out.dtype == x.dtype
    assert jnp.allclose(out, ref, atol=2e-4, rtol=2e-4), \
        float(jnp.max(jnp.abs(out - ref)))

    # TODO(synk): running_mean/running_var tracking (eval-mode BatchNorm) is not
    # implemented; this reproduces the default training-mode forward.
    print("KERNEL_OK")
</pallas_src>

<mosaic_0001>
module attributes {stable_mosaic.version = 11 : i64} {
  func.func @_vn_stats_kernel(%arg0: i32, %arg1: i32, %arg2: memref<1x4x3x64xf32, #tpu.memory_space<vmem>>, %arg3: memref<8x4xf32, #tpu.memory_space<vmem>>, %arg4: memref<1x1x8x2xf32, #tpu.memory_space<vmem>>) attributes {dimension_semantics = [#tpu.dimension_semantics<parallel>, #tpu.dimension_semantics<parallel>], iteration_bounds = array<i64: 2, 1>, scalar_prefetch = 0 : i64, scratch_operands = 0 : i64, tpu.core_type = #tpu.core_type<tc>, window_params = [{transform_indices = @transform_0, window_bounds = array<i64: 1, 4, 3, 64>}, {pipeline_mode = #tpu.pipeline_mode<synchronous>, transform_indices = @transform_1, window_bounds = array<i64: 8, 4>}, {transform_indices = @transform_2, window_bounds = array<i64: 1, 1, 8, 2>}]} {
    %c0 = arith.constant 0 : index
    %c0_0 = arith.constant 0 : index
    %c0_1 = arith.constant 0 : index
    %c0_2 = arith.constant 0 : index
    %0 = vector.load %arg2[%c0, %c0_0, %c0_1, %c0_2] : memref<1x4x3x64xf32, #tpu.memory_space<vmem>>, vector<1x4x3x64xf32>
    %1 = vector.shape_cast %0 : vector<1x4x3x64xf32> to vector<4x3x64xf32>
    %c0_3 = arith.constant 0 : index
    %c0_4 = arith.constant 0 : index
    %2 = vector.load %arg3[%c0_3, %c0_4] : memref<8x4xf32, #tpu.memory_space<vmem>>, vector<8x4xf32>
    %3 = vector.extract_strided_slice %1 {offsets = [0, 0, 0], sizes = [4, 1, 64], strides = [1, 1, 1]} : vector<4x3x64xf32> to vector<4x1x64xf32>
    %4 = vector.shape_cast %3 : vector<4x1x64xf32> to vector<4x64xf32>
    %cst = arith.constant dense<0.000000e+00> : vector<8x64xf32>
    %5 = tpu.matmul %2, %4, %cst {dimension_numbers = #tpu.dot_dimension_numbers<[1], [0], [0], [1], [0, 0, 1, 1], [], []>, precision = #tpu.contract_precision<fp32>} : vector<8x4xf32>, vector<4x64xf32>, vector<8x64xf32> -> vector<8x64xf32>
    %6 = arith.mulf %5, %5 : vector<8x64xf32>
    %7 = vector.extract_strided_slice %1 {offsets = [0, 1, 0], sizes = [4, 1, 64], strides = [1, 1, 1]} : vector<4x3x64xf32> to vector<4x1x64xf32>
    %8 = vector.shape_cast %7 : vector<4x1x64xf32> to vector<4x64xf32>
    %cst_5 = arith.constant dense<0.000000e+00> : vector<8x64xf32>
    %9 = tpu.matmul %2, %8, %cst_5 {dimension_numbers = #tpu.dot_dimension_numbers<[1], [0], [0], [1], [0, 0, 1, 1], [], []>, precision = #tpu.contract_precision<fp32>} : vector<8x4xf32>, vector<4x64xf32>, vector<8x64xf32> -> vector<8x64xf32>
    %10 = arith.mulf %9, %9 : vector<8x64xf32>
    %11 = arith.addf %6, %10 : vector<8x64xf32>
    %12 = vector.extract_strided_slice %1 {offsets = [0, 2, 0], sizes = [4, 1, 64], strides = [1, 1, 1]} : vector<4x3x64xf32> to vector<4x1x64xf32>
    %13 = vector.shape_cast %12 : vector<4x1x64xf32> to vector<4x64xf32>
    %cst_6 = arith.constant dense<0.000000e+00> : vector<8x64xf32>
    %14 = tpu.matmul %2, %13, %cst_6 {dimension_numbers = #tpu.dot_dimension_numbers<[1], [0], [0], [1], [0, 0, 1, 1], [], []>, precision = #tpu.contract_precision<fp32>} : vector<8x4xf32>, vector<4x64xf32>, vector<8x64xf32> -> vector<8x64xf32>
    %15 = arith.mulf %14, %14 : vector<8x64xf32>
    %16 = arith.addf %11, %15 : vector<8x64xf32>
    %17 = math.sqrt %16 : vector<8x64xf32>
    %cst_7 = arith.constant 9.99999997E-7 : f32
    %18 = vector.broadcast %cst_7 : f32 to vector<8x64xf32>
    %19 = arith.addf %17, %18 : vector<8x64xf32>
    %cst_8 = arith.constant dense<0.000000e+00> : vector<8xf32>
    %20 = vector.multi_reduction <add>, %19, %cst_8 [1] : vector<8x64xf32> to vector<8xf32>
    %21 = vector.shape_cast %20 : vector<8xf32> to vector<8x1xf32>
    %c0_9 = arith.constant 0 : index
    %c0_10 = arith.constant 0 : index
    %c0_11 = arith.constant 0 : index
    %c0_12 = arith.constant 0 : index
    %22 = vector.load %arg4[%c0_9, %c0_10, %c0_11, %c0_12] : memref<1x1x8x2xf32, #tpu.memory_space<vmem>>, vector<1x1x8x1xf32>
    %23 = vector.shape_cast %22 : vector<1x1x8x1xf32> to vector<8x1xf32>
    %24 = vector.shape_cast %21 : vector<8x1xf32> to vector<1x1x8x1xf32>
    tpu.vector_store %arg4[%c0_9, %c0_10, %c0_11, %c0_12], %24 {strides = array<i32>} : memref<1x1x8x2xf32, #tpu.memory_space<vmem>>, vector<1x1x8x1xf32>,
    %25 = arith.mulf %19, %19 : vector<8x64xf32>
    %cst_13 = arith.constant dense<0.000000e+00> : vector<8xf32>
    %26 = vector.multi_reduction <add>, %25, %cst_13 [1] : vector<8x64xf32> to vector<8xf32>
    %27 = vector.shape_cast %26 : vector<8xf32> to vector<8x1xf32>
    %c0_14 = arith.constant 0 : index
    %c0_15 = arith.constant 0 : index
    %c0_16 = arith.constant 0 : index
    %c1 = arith.constant 1 : index
    %28 = vector.load %arg4[%c0_14, %c0_15, %c0_16, %c1] : memref<1x1x8x2xf32, #tpu.memory_space<vmem>>, vector<1x1x8x1xf32>
    %29 = vector.shape_cast %28 : vector<1x1x8x1xf32> to vector<8x1xf32>
    %30 = vector.shape_cast %27 : vector<8x1xf32> to vector<1x1x8x1xf32>
    tpu.vector_store %arg4[%c0_14, %c0_15, %c0_16, %c1], %30 {strides = array<i32>} : memref<1x1x8x2xf32, #tpu.memory_space<vmem>>, vector<1x1x8x1xf32>,
    return
  }
  func.func @transform_0(%arg0: i32, %arg1: i32) -> (i32, i32, i32, i32) {
    %c0_i32 = arith.constant 0 : i32
    %c0_i32_0 = arith.constant 0 : i32
    %c0_i32_1 = arith.constant 0 : i32
    return %arg0, %c0_i32, %c0_i32_0, %arg1 : i32, i32, i32, i32
  }
  func.func @transform_1(%arg0: i32, %arg1: i32) -> (i32, i32) {
    %c0_i32 = arith.constant 0 : i32
    %c0_i32_0 = arith.constant 0 : i32
    %c0_i32_1 = arith.constant 0 : i32
    return %c0_i32, %c0_i32_0 : i32, i32
  }
  func.func @transform_2(%arg0: i32, %arg1: i32) -> (i32, i32, i32, i32) {
    %c0_i32 = arith.constant 0 : i32
    %c0_i32_0 = arith.constant 0 : i32
    %c0_i32_1 = arith.constant 0 : i32
    return %arg0, %arg1, %c0_i32, %c0_i32_0 : i32, i32, i32, i32
  }
}

module attributes {stable_mosaic.version = 11 : i64} {
  func.func @_vn_apply_kernel(%arg0: i32, %arg1: i32, %arg2: memref<1x4x3x64xf32, #tpu.memory_space<vmem>>, %arg3: memref<8x4xf32, #tpu.memory_space<vmem>>, %arg4: memref<8x4xf32, #tpu.memory_space<vmem>>, %arg5: memref<8x1xf32, #tpu.memory_space<vmem>>, %arg6: memref<8x1xf32, #tpu.memory_space<vmem>>, %arg7: memref<1x8x3x64xf32, #tpu.memory_space<vmem>>) attributes {dimension_semantics = [#tpu.dimension_semantics<parallel>, #tpu.dimension_semantics<parallel>], iteration_bounds = array<i64: 2, 1>, scalar_prefetch = 0 : i64, scratch_operands = 0 : i64, tpu.core_type = #tpu.core_type<tc>, window_params = [{transform_indices = @transform_0, window_bounds = array<i64: 1, 4, 3, 64>}, {pipeline_mode = #tpu.pipeline_mode<synchronous>, transform_indices = @transform_1, window_bounds = array<i64: 8, 4>}, {pipeline_mode = #tpu.pipeline_mode<synchronous>, transform_indices = @transform_2, window_bounds = array<i64: 8, 4>}, {pipeline_mode = #tpu.pipeline_mode<synchronous>, transform_indices = @transform_3, window_bounds = array<i64: 8, 1>}, {pipeline_mode = #tpu.pipeline_mode<synchronous>, transform_indices = @transform_4, window_bounds = array<i64: 8, 1>}, {transform_indices = @transform_5, window_bounds = array<i64: 1, 8, 3, 64>}]} {
    %c0 = arith.constant 0 : index
    %c0_0 = arith.constant 0 : index
    %c0_1 = arith.constant 0 : index
    %c0_2 = arith.constant 0 : index
    %0 = vector.load %arg2[%c0, %c0_0, %c0_1, %c0_2] : memref<1x4x3x64xf32, #tpu.memory_space<vmem>>, vector<1x4x3x64xf32>
    %1 = vector.shape_cast %0 : vector<1x4x3x64xf32> to vector<4x3x64xf32>
    %c0_3 = arith.constant 0 : index
    %c0_4 = arith.constant 0 : index
    %2 = vector.load %arg3[%c0_3, %c0_4] : memref<8x4xf32, #tpu.memory_space<vmem>>, vector<8x4xf32>
    %c0_5 = arith.constant 0 : index
    %c0_6 = arith.constant 0 : index
    %3 = vector.load %arg4[%c0_5, %c0_6] : memref<8x4xf32, #tpu.memory_space<vmem>>, vector<8x4xf32>
    %4 = vector.extract_strided_slice %1 {offsets = [0, 0, 0], sizes = [4, 1, 64], strides = [1, 1, 1]} : vector<4x3x64xf32> to vector<4x1x64xf32>
    %5 = vector.shape_cast %4 : vector<4x1x64xf32> to vector<4x64xf32>
    %cst = arith.constant dense<0.000000e+00> : vector<8x64xf32>
    %6 = tpu.matmul %2, %5, %cst {dimension_numbers = #tpu.dot_dimension_numbers<[1], [0], [0], [1], [0, 0, 1, 1], [], []>, precision = #tpu.contract_precision<fp32>} : vector<8x4xf32>, vector<4x64xf32>, vector<8x64xf32> -> vector<8x64xf32>
    %cst_7 = arith.constant dense<0.000000e+00> : vector<8x64xf32>
    %7 = tpu.matmul %3, %5, %cst_7 {dimension_numbers = #tpu.dot_dimension_numbers<[1], [0], [0], [1], [0, 0, 1, 1], [], []>, precision = #tpu.contract_precision<fp32>} : vector<8x4xf32>, vector<4x64xf32>, vector<8x64xf32> -> vector<8x64xf32>
    %8 = vector.extract_strided_slice %1 {offsets = [0, 1, 0], sizes = [4, 1, 64], strides = [1, 1, 1]} : vector<4x3x64xf32> to vector<4x1x64xf32>
    %9 = vector.shape_cast %8 : vector<4x1x64xf32> to vector<4x64xf32>
    %cst_8 = arith.constant dense<0.000000e+00> : vector<8x64xf32>
    %10 = tpu.matmul %2, %9, %cst_8 {dimension_numbers = #tpu.dot_dimension_numbers<[1], [0], [0], [1], [0, 0, 1, 1], [], []>, precision = #tpu.contract_precision<fp32>} : vector<8x4xf32>, vector<4x64xf32>, vector<8x64xf32> -> vector<8x64xf32>
    %cst_9 = arith.constant dense<0.000000e+00> : vector<8x64xf32>
    %11 = tpu.matmul %3, %9, %cst_9 {dimension_numbers = #tpu.dot_dimension_numbers<[1], [0], [0], [1], [0, 0, 1, 1], [], []>, precision = #tpu.contract_precision<fp32>} : vector<8x4xf32>, vector<4x64xf32>, vector<8x64xf32> -> vector<8x64xf32>
    %12 = vector.extract_strided_slice %1 {offsets = [0, 2, 0], sizes = [4, 1, 64], strides = [1, 1, 1]} : vector<4x3x64xf32> to vector<4x1x64xf32>
    %13 = vector.shape_cast %12 : vector<4x1x64xf32> to vector<4x64xf32>
    %cst_10 = arith.constant dense<0.000000e+00> : vector<8x64xf32>
    %14 = tpu.matmul %2, %13, %cst_10 {dimension_numbers = #tpu.dot_dimension_numbers<[1], [0], [0], [1], [0, 0, 1, 1], [], []>, precision = #tpu.contract_precision<fp32>} : vector<8x4xf32>, vector<4x64xf32>, vector<8x64xf32> -> vector<8x64xf32>
    %cst_11 = arith.constant dense<0.000000e+00> : vector<8x64xf32>
    %15 = tpu.matmul %3, %13, %cst_11 {dimension_numbers = #tpu.dot_dimension_numbers<[1], [0], [0], [1], [0, 0, 1, 1], [], []>, precision = #tpu.contract_precision<fp32>} : vector<8x4xf32>, vector<4x64xf32>, vector<8x64xf32> -> vector<8x64xf32>
    %16 = arith.mulf %6, %6 : vector<8x64xf32>
    %17 = arith.mulf %10, %10 : vector<8x64xf32>
    %18 = arith.addf %16, %17 : vector<8x64xf32>
    %19 = arith.mulf %14, %14 : vector<8x64xf32>
    %20 = arith.addf %18, %19 : vector<8x64xf32>
    %21 = math.sqrt %20 : vector<8x64xf32>
    %cst_12 = arith.constant 9.99999997E-7 : f32
    %22 = vector.broadcast %cst_12 : f32 to vector<8x64xf32>
    %23 = arith.addf %21, %22 : vector<8x64xf32>
    %cst_13 = arith.constant 1.000000e+00 : f32
    %24 = vector.broadcast %cst_13 : f32 to vector<8x64xf32>
    %25 = arith.divf %24, %23 : vector<8x64xf32>
    %c0_14 = arith.constant 0 : index
    %c0_15 = arith.constant 0 : index
    %26 = vector.load %arg5[%c0_14, %c0_15] : memref<8x1xf32, #tpu.memory_space<vmem>>, vector<8x1xf32>
    %c0_16 = arith.constant 0 : index
    %c0_17 = arith.constant 0 : index
    %27 = vector.load %arg6[%c0_16, %c0_17] : memref<8x1xf32, #tpu.memory_space<vmem>>, vector<8x1xf32>
    %28 = vector.broadcast %27 : vector<8x1xf32> to vector<8x64xf32>
    %29 = arith.mulf %28, %25 : vector<8x64xf32>
    %30 = vector.broadcast %26 : vector<8x1xf32> to vector<8x64xf32>
    %31 = arith.addf %30, %29 : vector<8x64xf32>
    %32 = arith.mulf %6, %31 : vector<8x64xf32>
    %33 = arith.mulf %10, %31 : vector<8x64xf32>
    %34 = arith.mulf %14, %31 : vector<8x64xf32>
    %35 = arith.mulf %32, %7 : vector<8x64xf32>
    %36 = arith.mulf %33, %11 : vector<8x64xf32>
    %37 = arith.addf %35, %36 : vector<8x64xf32>
    %38 = arith.mulf %34, %15 : vector<8x64xf32>
    %39 = arith.addf %37, %38 : vector<8x64xf32>
    %40 = arith.mulf %7, %7 : vector<8x64xf32>
    %41 = arith.mulf %11, %11 : vector<8x64xf32>
    %42 = arith.addf %40, %41 : vector<8x64xf32>
    %43 = arith.mulf %15, %15 : vector<8x64xf32>
    %44 = arith.addf %42, %43 : vector<8x64xf32>
    %cst_18 = arith.constant 9.99999997E-7 : f32
    %45 = vector.broadcast %cst_18 : f32 to vector<8x64xf32>
    %46 = arith.addf %44, %45 : vector<8x64xf32>
    %47 = arith.divf %39, %46 : vector<8x64xf32>
    %cst_19 = arith.constant 0.000000e+00 : f32
    %48 = vector.broadcast %cst_19 : f32 to vector<8x64xf32>
    %49 = arith.cmpf oge, %39, %48 : vector<8x64xf32>
    %50 = arith.mulf %47, %7 : vector<8x64xf32>
    %51 = arith.subf %32, %50 : vector<8x64xf32>
    %cst_20 = arith.constant 2.000000e-01 : f32
    %52 = vector.broadcast %cst_20 : f32 to vector<8x64xf32>
    %53 = arith.mulf %52, %32 : vector<8x64xf32>
    %54 = arith.select %49, %32, %51 : vector<8x64xi1>, vector<8x64xf32>
    %cst_21 = arith.constant 8.000000e-01 : f32
    %55 = vector.broadcast %cst_21 : f32 to vector<8x64xf32>
    %56 = arith.mulf %55, %54 : vector<8x64xf32>
    %57 = arith.addf %53, %56 : vector<8x64xf32>
    %58 = vector.shape_cast %57 : vector<8x64xf32> to vector<8x1x64xf32>
    %c0_22 = arith.constant 0 : index
    %c0_23 = arith.constant 0 : index
    %c0_24 = arith.constant 0 : index
    %c0_25 = arith.constant 0 : index
    %59 = vector.load %arg7[%c0_22, %c0_23, %c0_24, %c0_25] : memref<1x8x3x64xf32, #tpu.memory_space<vmem>>, vector<1x8x1x64xf32>
    %60 = vector.shape_cast %59 : vector<1x8x1x64xf32> to vector<8x1x64xf32>
    %61 = vector.shape_cast %58 : vector<8x1x64xf32> to vector<1x8x1x64xf32>
    tpu.vector_store %arg7[%c0_22, %c0_23, %c0_24, %c0_25], %61 {strides = array<i32>} : memref<1x8x3x64xf32, #tpu.memory_space<vmem>>, vector<1x8x1x64xf32>,
    %62 = arith.mulf %47, %11 : vector<8x64xf32>
    %63 = arith.subf %33, %62 : vector<8x64xf32>
    %cst_26 = arith.constant 2.000000e-01 : f32
    %64 = vector.broadcast %cst_26 : f32 to vector<8x64xf32>
    %65 = arith.mulf %64, %33 : vector<8x64xf32>
    %66 = arith.select %49, %33, %63 : vector<8x64xi1>, vector<8x64xf32>
    %cst_27 = arith.constant 8.000000e-01 : f32
    %67 = vector.broadcast %cst_27 : f32 to vector<8x64xf32>
    %68 = arith.mulf %67, %66 : vector<8x64xf32>
    %69 = arith.addf %65, %68 : vector<8x64xf32>
    %70 = vector.shape_cast %69 : vector<8x64xf32> to vector<8x1x64xf32>
    %c0_28 = arith.constant 0 : index
    %c0_29 = arith.constant 0 : index
    %c1 = arith.constant 1 : index
    %c0_30 = arith.constant 0 : index
    %71 = vector.load %arg7[%c0_28, %c0_29, %c1, %c0_30] : memref<1x8x3x64xf32, #tpu.memory_space<vmem>>, vector<1x8x1x64xf32>
    %72 = vector.shape_cast %71 : vector<1x8x1x64xf32> to vector<8x1x64xf32>
    %73 = vector.shape_cast %70 : vector<8x1x64xf32> to vector<1x8x1x64xf32>
    tpu.vector_store %arg7[%c0_28, %c0_29, %c1, %c0_30], %73 {strides = array<i32>} : memref<1x8x3x64xf32, #tpu.memory_space<vmem>>, vector<1x8x1x64xf32>,
    %74 = arith.mulf %47, %15 : vector<8x64xf32>
    %75 = arith.subf %34, %74 : vector<8x64xf32>
    %cst_31 = arith.constant 2.000000e-01 : f32
    %76 = vector.broadcast %cst_31 : f32 to vector<8x64xf32>
    %77 = arith.mulf %76, %34 : vector<8x64xf32>
    %78 = arith.select %49, %34, %75 : vector<8x64xi1>, vector<8x64xf32>
    %cst_32 = arith.constant 8.000000e-01 : f32
    %79 = vector.broadcast %cst_32 : f32 to vector<8x64xf32>
    %80 = arith.mulf %79, %78 : vector<8x64xf32>
    %81 = arith.addf %77, %80 : vector<8x64xf32>
    %82 = vector.shape_cast %81 : vector<8x64xf32> to vector<8x1x64xf32>
    %c0_33 = arith.constant 0 : index
    %c0_34 = arith.constant 0 : index
    %c2 = arith.constant 2 : index
    %c0_35 = arith.constant 0 : index
    %83 = vector.load %arg7[%c0_33, %c0_34, %c2, %c0_35] : memref<1x8x3x64xf32, #tpu.memory_space<vmem>>, vector<1x8x1x64xf32>
    %84 = vector.shape_cast %83 : vector<1x8x1x64xf32> to vector<8x1x64xf32>
    %85 = vector.shape_cast %82 : vector<8x1x64xf32> to vector<1x8x1x64xf32>
    tpu.vector_store %arg7[%c0_33, %c0_34, %c2, %c0_35], %85 {strides = array<i32>} : memref<1x8x3x64xf32, #tpu.memory_space<vmem>>, vector<1x8x1x64xf32>,
    return
  }
  func.func @transform_0(%arg0: i32, %arg1: i32) -> (i32, i32, i32, i32) {
    %c0_i32 = arith.constant 0 : i32
    %c0_i32_0 = arith.constant 0 : i32
    %c0_i32_1 = arith.constant 0 : i32
    return %arg0, %c0_i32, %c0_i32_0, %arg1 : i32, i32, i32, i32
  }
  func.func @transform_1(%arg0: i32, %arg1: i32) -> (i32, i32) {
    %c0_i32 = arith.constant 0 : i32
    %c0_i32_0 = arith.constant 0 : i32
    %c0_i32_1 = arith.constant 0 : i32
    return %c0_i32, %c0_i32_0 : i32, i32
  }
  func.func @transform_2(%arg0: i32, %arg1: i32) -> (i32, i32) {
    %c0_i32 = arith.constant 0 : i32
    %c0_i32_0 = arith.constant 0 : i32
    %c0_i32_1 = arith.constant 0 : i32
    return %c0_i32, %c0_i32_0 : i32, i32
  }
  func.func @transform_3(%arg0: i32, %arg1: i32) -> (i32, i32) {
    %c0_i32 = arith.constant 0 : i32
    %c0_i32_0 = arith.constant 0 : i32
    %c0_i32_1 = arith.constant 0 : i32
    return %c0_i32, %c0_i32_0 : i32, i32
  }
  func.func @transform_4(%arg0: i32, %arg1: i32) -> (i32, i32) {
    %c0_i32 = arith.constant 0 : i32
    %c0_i32_0 = arith.constant 0 : i32
    %c0_i32_1 = arith.constant 0 : i32
    return %c0_i32, %c0_i32_0 : i32, i32
  }
  func.func @transform_5(%arg0: i32, %arg1: i32) -> (i32, i32, i32, i32) {
    %c0_i32 = arith.constant 0 : i32
    %c0_i32_0 = arith.constant 0 : i32
    %c0_i32_1 = arith.constant 0 : i32
    return %arg0, %c0_i32, %c0_i32_0, %arg1 : i32, i32, i32, i32
  }
}

</mosaic_0001>

<bundles_post_ra>
// kernel: vn_linear_leaky_relu.2
= control target key start
LH: loop header
LB: loop body
LE: loop exit
PB: predicated region body
PF: predicated region fallthrough
CT: control target
= control target key end

     0   :  { %7 = vsyncpa [#allocation3], 0  ;;  %s2444_s0 = inlined_call_operand.hbm [shape: f32[2,4,3,64], index: 0, kind: input, shape index: {}]   ;;  %s2445_s1 = inlined_call_operand.hbm [shape: f32[8,4], index: 1, kind: input, shape index: {}]   ;;  %s2446_s2 = inlined_call_operand.hbm [shape: f32[2,1,8,2], index: 2, kind: output, shape index: {}]  }
   0x1   :  { %9 = vsyncpa [#allocation3 + $0x1], 0 }
   0x2   :  { %10 = vsyncpa [#allocation6], 0 }
   0x3   :  { %11 = vsyncpa [#allocation4], 0 }
   0x4   :  { %13 = vsyncpa [#allocation4 + $0x1], 0  ;;  %s2121_s9 = smov 0   ;;  %s2123_s10 = smov 0  }
   0x5   :  { %s2125_s11 = smov 0   ;;  %s2127_s12 = smov 0  }
   0x6   :  { %s2129_s13 = smov 0   ;;  %s2131_s14 = smov 0  }
   0x7 LB: > { %s1702_s15 = sadd.s32 4294967295, %s2097_s14   ;;  %s1703_s16 = sadd.s32 4294967294, %s2097_s14   ;;  %s2097_s14 = sphi %s2131_s14, %s19_s14   ;;  %s2093_s13 = sphi %s2129_s13, %s2474_s13   ;;  %s2089_s12 = sphi %s2127_s12, %s2473_s12   ;;  %s2085_s11 = sphi %s2125_s11, %s2472_s11   ;;  %s2081_s10 = sphi %s2123_s10, %s2471_s10   ;;  %s2077_s9 = sphi %s2121_s9, %s2470_s9  }
   0x8   : > { %s40_s17 = sadd.s32 1, %s2085_s11  ;;  %p47_p0 = scmp.ne.s32.totalorder %s2085_s11, %s2081_s10 }
   0x9   : > { %p48_p1 = scmp.eq.s32.totalorder %s2097_s14, 0  ;;  %p53_p2 = scmp.ne.s32.totalorder %s2081_s10, %s2077_s9 }
   0xa   : > { %p2159_p3 = scmp.eq.s32.totalorder %s1702_s15, 0  ;;  %p100_p4 = scmp.eq.s32.totalorder %s1702_s15, 1 }
   0xb   : > { %p2163_p5 = por %p48_p1, %p47_p0  ;;  %p106_p6 = scmp.eq.s32.totalorder %s1703_s16, 1 }
   0xc   : > { %s2453_s18 = scalar_select %p2159_p3, 1, 0 }
   0xd   : > { %p2169_p7 = por %p2159_p3, %p53_p2  ;;  %p2173_p8 = por %p100_p4, %p47_p0 }
   0xe   : > { %p2177_p9 = por %p106_p6, %p53_p2  ;;  %p1704_p10 = scmp.ge.s32.totalorder %s2097_s14, 1 }
   0xf   : > { %s2455_s20 = scalar_select %p2169_p7, 1, 0 }
  0x10   : > { %s2456_s21 = scalar_select %p2173_p8, 1, 0 }
  0x11   : > { %s2457_s22 = scalar_select %p2177_p9, 1, 0 }
  0x12   : > { %p113_p11 = scmp.lt.s32.totalorder %s2097_s14, 3  ;;  %s2099_s24 = smov [#allocation5]  }
  0x13   : > { %s126_s25 = sshll.u32 %s2099_s24, 4  ;;  %p1895_p1 = scmp.lt.s32.totalorder %s2097_s14, 2  ;;  %s127_s25 = int_to_ptr.vmem [resolvable:$true] %s126_s25 }
  0x14   : > { %p2184_p13 = pnand %p1704_p10, %p113_p11  ;;  %s31_s28 = sadd.s32 1, %s2093_s13 }
  0x15   : > { %p2193_p4 = pnand %p1895_p1, %p2163_p5  ;;  %p2204_p6 = scmp.ge.s32.totalorder %s31_s28, 2 }
  0x16   : > { %s2458_s23 = scalar_select %p2184_p13, 1, 0 }
  0x17   : > { %p1882_p0 = pneg %p2184_p13  ;;  %s137_s30 = sand.u32 1, %s2085_s11  }
  0x18   : > { %s2459_s26 = scalar_select %p2193_p4, 1, 0 }
  0x19   : > { %p2199_p2 = pnand %p1882_p0, %p2159_p3  ;;  %s1953_s5 = scalar_lea.hbm %s2445_s1, 128 }
  0x1a   : > { %s2461_s29 = scalar_select %p2204_p6, 1, 0 }
  0x1b   : > { %p1954_p5 = scmp.ne.s32.totalorder %s2445_s1, %s1953_s5  ;;  %p1955_p10 = pneg %p2199_p2 }
  0x1c   : > { %p1960_p0 = scmp.lt.u32.totalorder %s1953_s5, %s2445_s1 }
  0x1d   : > { %p1956_p11 = pnand %p1955_p10, %p1954_p5 }
  0x1f   : > { %p1957_p1 = pneg %p1956_p11 }
  0x21   : > { %p1962_p12 = pnand %p1960_p0, %p1957_p1 }
  0x23   : > { %1965 = shalt.err (!%p1962_p12)
}
  0x24   : > { %s1966_s16 = scalar_lea.vmem %s127_s25, 128  ;;  %p1974_p7 = scmp.lt.s32.totalorder %s127_s25, %s127_s25 }
  0x25   : > { %p1967_p9 = scmp.ne.s32.totalorder %s127_s25, %s1966_s16  ;;  %p1975_p13 = scmp.lt.s32.totalorder %s1966_s16, %s1966_s16 }
  0x27   : > { %p1969_p8 = pnand %p1967_p9, %p1955_p10  ;;  %p1976_p4 = por %p1975_p13, %p1974_p7 }
  0x29   : > { %p1970_p3 = pneg %p1969_p8 }
  0x2b   : > { %p1977_p6 = pnand %p1976_p4, %p1970_p3 }
  0x2d   : > { %1980 = shalt.err (!%p1977_p6)
}
  0x2e   : > { %1885 = dma.hbm_to_vmem [thread:$0]  (!%p2199_p2), %s2445_s1, 128, %s127_s25, [#allocation6]  }
  0x2f   : > { %p2462_p9 = scmp.ne.s32.totalorder %s2461_s29, 0  ;;  %s1707_s3 = sshll.u32 %s137_s30, 4 }
  0x30   : > { %s1718_s5 = sshll.u32 %s2093_s13, 8  ;;  %s141_s8 = scalar_lea.vmem [#allocation2], %s1707_s3 }
  0x31   : > { %s2476_s28 = smov (%p2462_p9, %s31_s28), 0  ;;  %s2235_s7 = scalar_lea.hbm %s2444_s0, %s1718_s5 }
  0x32   : > { %s35_s4 = ssub.s32 %s2093_s13, %s2476_s28  ;;  %s149_s15 = sshll.u32 %s141_s8, 4  ;;  %s2242_s15 = int_to_ptr.vmem [resolvable:$true] %s149_s15 }
  0x33   : > { %p38_p3 = scmp.eq.s32.totalorder %s35_s4, 0  ;;  %s2244_s29 = scalar_lea.sflag [#allocation3], %s137_s30 }
  0x34   : > { %s1981_s16 = scalar_lea.hbm %s2235_s7, 256  ;;  %p2463_p8 = scmp.ne.s32.totalorder %s2459_s26, 0 }
  0x35   : > { %s2240_s25 = scalar_select %p38_p3, %s2085_s11, %s40_s17  }
  0x36   : > { %p1982_p7 = scmp.ne.s32.totalorder %s2235_s7, %s1981_s16  ;;  %p1983_p12 = pneg %p2463_p8 }
  0x37   : > { %s1986_s3 = scalar_lea.hbm %s2444_s0, 512  ;;  %p1987_p2 = scmp.lt.u32.totalorder %s2235_s7, %s2444_s0 }
  0x38   : > { %p1984_p13 = pnand %p1983_p12, %p1982_p7  ;;  %p1988_p6 = scmp.lt.u32.totalorder %s1986_s3, %s1981_s16 }
  0x39   : > { %p1990_p10 = scmp.lt.u32.totalorder %s1981_s16, %s2235_s7 }
  0x3a   : > { %p1985_p4 = pneg %p1984_p13  ;;  %p1989_p5 = por %p1988_p6, %p1987_p2 }
  0x3c   : > { %p1991_p11 = por %p1990_p10, %p1989_p5 }
  0x3e   : > { %p1992_p1 = pnand %p1991_p11, %p1985_p4 }
  0x40   : > { %1995 = shalt.err (!%p1992_p1)
}
  0x41   : > { %s1996_s17 = scalar_lea.vmem %s2242_s15, 256  ;;  %s2100_s30 = smov [#allocation2]  }
  0x42   : > { %p1997_p0 = scmp.ne.s32.totalorder %s2242_s15, %s1996_s17  ;;  %s2001_s27 = sshll.u32 %s2100_s30, 4  ;;  %s2002_s27 = int_to_ptr.vmem [resolvable:$false] %s2001_s27 }
  0x43   : > { %s2003_s6 = scalar_lea.vmem %s2002_s27, 512  ;;  %p2004_p7 = scmp.lt.s32.totalorder %s2242_s15, %s2002_s27 }
  0x44   : > { %p1999_p9 = pnand %p1997_p0, %p1983_p12  ;;  %p2005_p13 = scmp.lt.s32.totalorder %s2003_s6, %s1996_s17 }
  0x46   : > { %p2000_p3 = pneg %p1999_p9  ;;  %p2006_p2 = por %p2005_p13, %p2004_p7 }
  0x48   : > { %p2007_p6 = pnand %p2006_p2, %p2000_p3 }
  0x4a   : > { %2010 = shalt.err (!%p2007_p6)
}
  0x4b   : > { %s2101_s8 = smov 64   ;;  %s2102_s16 = smov 4  }
  0x4c   : > { %1889 = dma.hbm_to_vmem [thread:$0]  (!%p2463_p8), %s2235_s7, 256, %s2242_s15, %s2244_s29, %s2101_s8, %s2101_s8, %s2102_s16  }
  0x4d   : > { %p2464_p12 = scmp.ne.s32.totalorder %s2458_s23, 0 }
  0x4e   : > { %s2275_s19 = sand.u32 (!%p2464_p12), 1, %s2081_s10   ;;  %p2465_p4 = scmp.ne.s32.totalorder (!%p2464_p12), %s2455_s20, 0 }
  0x4f   : > { %161 = sbr.rel (%p2464_p12) target bundleno = 561 (0x231), region = 28  ;;  %s1711_s24 = sshll.u32 (!%p2464_p12), %s2275_s19, 4 }
  0x50   : > { %s164_s3 = scalar_lea.sflag (!%p2464_p12), [#allocation3], %s2275_s19  ;;  %s167_s4 = scalar_lea.vmem (!%p2464_p12), [#allocation2], %s1711_s24 }
  0x56   : > { %2064 = dma.done.wait (%p2465_p4), %s164_s3, 256  }
  0x57   : > { %2066 = vsyncadd (%p2465_p4), %s164_s3, 4294967040  ;;  %p2466_p5 = scmp.ne.s32.totalorder %s2453_s18, 0 }
  0x59   : > { %2068 = dma.done.wait (%p2466_p5), [#allocation6], 128  }
  0x5a   : > { %2070 = vsyncadd (%p2466_p5), [#allocation6], 4294967168  ;;  %v2103_v0 = vmov 0.0   ;;  %vm2104_vm0 = vmmov 0   ;;  %vm202_vm1 = vcmask 1041409   ;;  %vm205_vm2 = vcmask 1042434  }
  0x5b   : > { %1770 = vmatprep.subr.mxu0 %v2103_v0  ;;  %1755 = vmatprep.subr.mxu1 %v2103_v0  ;;  %vm208_vm3 = vcmask 1043459   ;;  %vm214_vm4 = vcmask 1043456   ;;  %vm210_vm5 = vcmask 31744   ;;  %v192_v1 = vld [vmem:[%s167_s4] sm:$0x7]  ;;  %vm1584_vm8 = vcmask 523264  }
  0x5c   : > { %1772 = vmatprep.mubr.msk.f32.mxu0 %vm2104_vm0, %v2103_v0  ;;  %1757 = vmatprep.mubr.msk.f32.mxu1 %vm2104_vm0, %v2103_v0  ;;  %v193_v2 = vld [vmem:[%s167_s4 + $0x4] sm:$0x7]  ;;  %v194_v3 = vld [vmem:[%s167_s4 + $0x8] sm:$0x7]  ;;  %v195_v4 = vld [vmem:[%s167_s4 + $0xc] sm:$0x7] }
  0x5d   : > { %v201_v5 = vrot.slane %v193_v2, 7  ;;  %v204_v6 = vrot.slane %v194_v3, 6  ;;  %v196_v7 = vld [vmem:[#allocation5] sm:$0xff]  ;;  %v1120_v8 = vrot.slane %v192_v1, 2  ;;  %v207_v9 = vrot.slane %v195_v4, 5  ;;  %s1713_s18 = sshll.u32 %s2275_s19, 3 }
  0x5e   : > { %v212_v10 = vsel %vm210_vm5, %v196_v7, 0  ;;  %v1121_v11 = vrot.slane %v193_v2, 1  ;;  %v1124_v12 = vrot.slane %v195_v4, 7  ;;  %v664_v15 = vrot.slane %v192_v1, 1  ;;  %s1715_s20 = sshll.u32 %s2089_s12, 7  ;;  %s191_s23 = scalar_lea.vmem [#allocation7], %s1713_s18 }
  0x5f   : > { %v203_v13 = vsel %vm202_vm1, %v201_v5, %v192_v1  ;;  %v2294_v14 = vand.u32 4294901760, %v212_v10  ;;  %v666_v16 = vrot.slane %v194_v3, 7  ;;  %v668_v19 = vrot.slane %v195_v4, 6  ;;  %s1611_s26 = sshll.u32 %s191_s23, 4  ;;  %s2395_s29 = scalar_lea.hbm %s2446_s2, %s1715_s20  ;;  %s2397_s26 = int_to_ptr.vmem [resolvable:$true] %s1611_s26 }
  0x60   : > { %v206_v17 = vsel %vm205_vm2, %v204_v6, %v203_v13  ;;  %v1122_v18 = vsel %vm202_vm1, %v1121_v11, %v1120_v8  ;;  %v665_v23 = vsel %vm202_vm1, %v193_v2, %v664_v15  ;;  %vm1588_vm9 = vcmask 7168   ;;  %s1597_s5 = scalar_lea.sflag [#allocation4], %s2275_s19  ;;  %s2011_s17 = scalar_lea.vmem %s2397_s26, 128 }
  0x61   : > { %v209_v20 = vsel %vm208_vm3, %v207_v9, %v206_v17  ;;  %v2300_v21 = vsub.f32 %v212_v10, %v2294_v14  ;;  %v1123_v22 = vsel %vm205_vm2, %v194_v3, %v1122_v18  ;;  %v667_v26 = vsel %vm205_vm2, %v666_v16, %v665_v23  ;;  %p2012_p8 = scmp.ne.s32.totalorder %s2397_s26, %s2011_s17  ;;  %p2467_p10 = scmp.ne.s32.totalorder %s2456_s21, 0 }
  0x62   : > { %v215_v24 = vsel %vm214_vm4, %v209_v20, 0  ;;  %v1125_v25 = vsel %vm208_vm3, %v1124_v12, %v1123_v22  ;;  %v669_v29 = vsel %vm208_vm3, %v668_v19, %v667_v26  ;;  %vm1594_vm10 = vcmask 15368   ;;  %s2105_s12 = smov [#allocation7]  }
  0x63   : > { %v218_v27 = vand.u32 4294901760, %v215_v24  ;;  %v2308_v28 = vand.u32 4294901760, %v2300_v21  ;;  %v1126_v32 = vsel %vm214_vm4, %v1125_v25, 0  ;;  %v670_v35 = vsel %vm214_vm4, %v669_v29, 0  ;;  %p2013_p11 = pnand %p2012_p8, %p2467_p10  ;;  %s2015_s30 = sshll.u32 %s2105_s12, 4  ;;  %s2016_s30 = int_to_ptr.vmem [resolvable:$false] %s2015_s30 }
  0x64   : > { %v2320_v36 = vand.u32 4294901760, %v1126_v32  ;;  %v2325_v38 = vand.u32 4294901760, %v670_v35  ;;  %s2017_s27 = scalar_lea.vmem %s2016_s30, 256  ;;  %p2018_p0 = scmp.lt.s32.totalorder %s2397_s26, %s2016_s30 }
  0x65   : > { %v295_v30 = vsub.f32 %v215_v24, %v218_v27  ;;  %1771 = vmatpush3.msra.mxu0 %v218_v27  ;;  %1756 = vmatpush3.msra.mxu1 %v218_v27  ;;  %v286_v31 = vsub.f32 %v2300_v21, %v2308_v28  ;;  %p2014_p1 = pneg %p2013_p11  ;;  %p2019_p9 = scmp.lt.s32.totalorder %s2017_s27, %s2011_s17 }
  0x66   : > { %1773 = vmatmul.mubr.f32.vlgmr.msra.gmra.mrb[0].mxu0 %v2308_v28  ;;  %1760 = vmatprep.subr.mxu1 %v2103_v0  ;;  %v1206_v40 = vsub.f32 %v1126_v32, %v2320_v36  ;;  %v750_v41 = vsub.f32 %v670_v35, %v2325_v38 }
  0x67   : > { %v287_v33 = vand.u32 4294901760, %v286_v31  ;;  %1775 = vmatprep.subr.mxu0 %v2103_v0  ;;  %v296_v34 = vand.u32 4294901760, %v295_v30  ;;  %1777 = vmatprep.mubr.msk.f32.mxu0 %vm2104_vm0, %v2103_v0  ;;  %p2020_p3 = por %p2019_p9, %p2018_p0 }
  0x68   : > { %v1207_v42 = vand.u32 4294901760, %v1206_v40  ;;  %v751_v43 = vand.u32 4294901760, %v750_v41 }
  0x69   : > { %1758 = vmatmul.mubr.f32.vlgmr.msra.gmra.mrb[0].mxu1 %v287_v33  ;;  %v297_v37 = vsub.f32 %v295_v30, %v296_v34  ;;  %1776 = vmatpush3.msra.mxu0 %v296_v34  ;;  %p2021_p7 = pnand %p2020_p3, %p2014_p1 }
  0x6a   : > { %1762 = vmatprep.mubr.msk.f32.mxu1 %vm2104_vm0, %v2103_v0  ;;  %1780 = vmatprep.subr.mxu0 %v2103_v0  ;;  %v1208_v44 = vsub.f32 %v1206_v40, %v1207_v42  ;;  %v752_v45 = vsub.f32 %v750_v41, %v751_v43 }
  0x6b   : > { %v298_v39 = vand.u32 4294901760, %v297_v37 }
  0x6c   : > { %v1209_v46 = vand.u32 4294901760, %v1208_v44  ;;  %v753_v47 = vand.u32 4294901760, %v752_v45 }
  0x6d   : > { %1761 = vmatpush3.msra.mxu1 %v298_v39 }
  0x6e   : > { %1778 = vmatmul.mubr.f32.vlgmr.msra.gmra.mrb[0].mxu0 %v2294_v14  ;;  %1765 = vmatprep.subr.mxu1 %v2103_v0 }
  0x6f   : > { %1781 = vmatpush3.msra.mxu0 %v218_v27  ;;  %1782 = vmatprep.mubr.msk.f32.mxu0 %vm2104_vm0, %v2103_v0 }
  0x70   : > { %1815 = vmatprep.subr.mxu0 %v2103_v0 }
  0x71   : > { %1763 = vmatmul.mubr.f32.vlgmr.msra.gmra.mrb[0].mxu1 %v2294_v14 }
  0x72   : > { %1766 = vmatpush3.msra.mxu1 %v295_v30  ;;  %1767 = vmatprep.mubr.msk.f32.mxu1 %vm2104_vm0, %v2103_v0 }
  0x73   : > { %1785 = vmatprep.subr.mxu1 %v2103_v0 }
  0x76   : > { %1783 = vmatmul.mubr.f32.vlgmr.msra.gmra.mrb[0].mxu0 %v2294_v14 }
  0x77   : > { %1816 = vmatpush3.msra.mxu0 %v2320_v36  ;;  %1817 = vmatprep.mubr.msk.f32.mxu0 %vm2104_vm0, %v2103_v0 }
  0x78   : > { %1820 = vmatprep.subr.mxu0 %v2103_v0 }
  0x79   : > { %1768 = vmatmul.mubr.f32.vlgmr.msra.gmra.mrb[0].mxu1 %v2300_v21 }
  0x7a   : > { %1818 = vmatmul.mubr.f32.vlgmr.msra.gmra.mrb[2].mxu0 %v287_v33  ;;  %1786 = vmatpush3.msra.mxu1 %v2325_v38 }
  0x7b   : > { %1787 = vmatprep.mubr.msk.f32.mxu1 %vm2104_vm0, %v2103_v0  ;;  %1790 = vmatprep.subr.mxu1 %v2103_v0 }
  0x7c   : > { %1821 = vmatpush3.msra.mxu0 %v1209_v46  ;;  %1822 = vmatprep.mubr.msk.f32.mxu0 %vm2104_vm0, %v2103_v0 }
  0x7d   : > { %1788 = vmatmul.mubr.f32.vlgmr.msra.gmra.mrb[2].mxu1 %v287_v33  ;;  %1825 = vmatprep.subr.mxu0 %v2103_v0 }
  0x7e   : > { %1791 = vmatpush3.msra.mxu1 %v753_v47  ;;  %1792 = vmatprep.mubr.msk.f32.mxu1 %vm2104_vm0, %v2103_v0 }
  0x7f   : > { %1795 = vmatprep.subr.mxu1 %v2103_v0 }
  0x82   : > { %1823 = vmatmul.mubr.f32.vlgmr.msra.gmra.mrb[2].mxu0 %v2294_v14 }
  0x83   : > { %1826 = vmatpush3.msra.mxu0 %v1206_v40  ;;  %1827 = vmatprep.mubr.msk.f32.mxu0 %vm2104_vm0, %v2103_v0 }
  0x84   : > { %1830 = vmatprep.subr.mxu0 %v2103_v0 }
  0x85   : > { %1793 = vmatmul.mubr.f32.vlgmr.msra.gmra.mrb[2].mxu1 %v2294_v14 }
  0x86   : > { %1796 = vmatpush3.msra.mxu1 %v750_v41  ;;  %1797 = vmatprep.mubr.msk.f32.mxu1 %vm2104_vm0, %v2103_v0 }
  0x87   : > { %1800 = vmatprep.subr.mxu1 %v2103_v0 }
  0x8a   : > { %1828 = vmatmul.mubr.f32.vlgmr.msra.gmra.mrb[2].mxu0 %v2300_v21 }
  0x8b   : > { %1831 = vmatpush3.msra.mxu0 %v2320_v36  ;;  %1832 = vmatprep.mubr.msk.f32.mxu0 %vm2104_vm0, %v2103_v0 }
  0x8c   : > { %1835 = vmatprep.subr.mxu0 %v2103_v0 }
  0x8d   : > { %1798 = vmatmul.mubr.f32.vlgmr.msra.gmra.mrb[2].mxu1 %v2300_v21 }
  0x8e   : > { %1801 = vmatpush3.msra.mxu1 %v2325_v38  ;;  %1802 = vmatprep.mubr.msk.f32.mxu1 %vm2104_vm0, %v2103_v0 }
  0x8f   : > { %1805 = vmatprep.subr.mxu1 %v2103_v0 }
  0x92   : > { %1833 = vmatmul.mubr.f32.vlgmr.msra.gmra.mrb[2].mxu0 %v2308_v28 }
  0x93   : > { %1836 = vmatpush3.msra.mxu0 %v1207_v42  ;;  %1837 = vmatprep.mubr.msk.f32.mxu0 %vm2104_vm0, %v2103_v0 }
  0x94   : > { %1840 = vmatprep.subr.mxu0 %v2103_v0 }
  0x95   : > { %1803 = vmatmul.mubr.f32.vlgmr.msra.gmra.mrb[2].mxu1 %v2308_v28 }
  0x96   : > { %1806 = vmatpush3.msra.mxu1 %v751_v43  ;;  %1807 = vmatprep.mubr.msk.f32.mxu1 %vm2104_vm0, %v2103_v0 }
  0x97   : > { %1810 = vmatprep.subr.mxu1 %v2103_v0 }
  0x9a   : > { %1838 = vmatmul.mubr.f32.vlgmr.msra.gmra.mrb[2].mxu0 %v2294_v14 }
  0x9b   : > { %1841 = vmatpush3.msra.mxu0 %v2320_v36  ;;  %1842 = vmatprep.mubr.msk.f32.mxu0 %vm2104_vm0, %v2103_v0 }
  0x9d   : > { %1808 = vmatmul.mubr.f32.vlgmr.msra.gmra.mrb[2].mxu1 %v2294_v14 }
  0x9e   : > { %1811 = vmatpush3.msra.mxu1 %v2325_v38  ;;  %1812 = vmatprep.mubr.msk.f32.mxu1 %vm2104_vm0, %v2103_v0 }
  0xa2   : > { %1843 = vmatmul.mubr.f32.vlgmr.msra.gmra.mrb[2].mxu0 %v2294_v14 }
  0xa5   : > { %1813 = vmatmul.mubr.f32.vlgmr.msra.gmra.mrb[2].mxu1 %v2294_v14 }
 0x149   : > { %v659_v48 = vpop.f32.mrb[0].mxu0 }
 0x14a   : > { %v1784_v49 = vpop.f32.mrb[1].mxu0 }
 0x14c   : > { %v439_v50 = vpop.f32.mrb[0].mxu1 }
 0x14d   : > { %v1845_v51 = vadd.f32 %v659_v48, %v439_v50  ;;  %v1769_v52 = vpop.f32.mrb[1].mxu1 }
 0x14f   : > { %v663_v56 = vmul.f32 %v1845_v51, %v1845_v51 }
 0x175   : > { %v1570_v53 = vpop.f32.mrb[2].mxu0 }
 0x176   : > { %v1844_v54 = vpop.f32.mrb[3].mxu0  ;;  %v1574_v59 = vmul.f32 %v1570_v53, %v1570_v53 }
 0x178   : > { %v1114_v55 = vpop.f32.mrb[2].mxu1 }
 0x179   : > { %v1118_v57 = vmul.f32 %v1114_v55, %v1114_v55  ;;  %v1814_v58 = vpop.f32.mrb[3].mxu1 }
 0x17b   : > { %v1119_v60 = vadd.f32 %v1118_v57, %v663_v56 }
 0x17d   : > { %v1575_v61 = vadd.f32 %v1574_v59, %v1119_v60 }
 0x17f   : > { %1951 = vrsqrt.f32 %v1575_v61  ;;  %vm1578_vm6 = vcmp.eq.f32.partialorder %v1575_v61, inf  ;;  %v1581_v0 = vand.u32 2147483648, %v1575_v61  ;;  %vm1580_vm7 = vcmp.eq.f32.partialorder %v1575_v61, 0.0 }
 0x189   : > { %v1952_v62 = vpop.eup %1951 }
 0x18a   : > { %v1577_v63 = vmul.f32 %v1952_v62, %v1575_v61 }
 0x18c   : > { %v1579_v1 = vsel %vm1578_vm6, %v1575_v61, %v1577_v63 }
 0x18d   : > { %v1582_v2 = vsel %vm1580_vm7, %v1581_v0, %v1579_v1 }
 0x18e   : > { %v1583_v3 = vadd.f32 1e-06, %v1582_v2 }
 0x190   : > { %v1585_v4 = vsel %vm1584_vm8, %v1583_v3, 0.0  ;;  %v1590_v5 = vmul.f32 %v1583_v3, %v1583_v3 }
 0x191   : > { %1586 = vadd.xlane.f32.xlu0 %v1585_v4 }
 0x192   : > { %v1591_v6 = vsel %vm1584_vm8, %v1590_v5, 0.0 }
 0x195   : > { %1592 = vadd.xlane.f32.xlu0 %v1591_v6 }
 0x21e   : > { %v1587_v7 = vpop.xlane.xlu0 %1586 }
 0x21f   : > { %1589 = vst.msk [vmem:[%s191_s23] sm:$0xff] %vm1588_vm9, %v1587_v7 }
 0x222   : > { %v1593_v8 = vpop.xlane.xlu0 %1592 }
 0x223   : > { %1595 = vst.msk [vmem:[%s191_s23] sm:$0xff] %vm1594_vm10, %v1593_v8 }
 0x224   : > { %2024 = shalt.err (!%p2021_p7)
}
 0x225   : > { %s2025_s6 = scalar_lea.hbm %s2395_s29, 128  ;;  %s2029_s19 = scalar_lea.hbm %s2446_s2, 256 }
 0x226   : > { %p2026_p13 = scmp.ne.s32.totalorder %s2395_s29, %s2025_s6  ;;  %p2030_p12 = scmp.lt.u32.totalorder %s2395_s29, %s2446_s2 }
 0x227   : > { %p2031_p4 = scmp.lt.u32.totalorder %s2029_s19, %s2025_s6  ;;  %p2033_p8 = scmp.lt.u32.totalorder %s2025_s6, %s2395_s29 }
 0x228   : > { %p2027_p2 = pnand %p2026_p13, %p2467_p10 }
 0x229   : > { %p2032_p5 = por %p2031_p4, %p2030_p12 }
 0x22a   : > { %p2028_p6 = pneg %p2027_p2 }
 0x22b   : > { %p2034_p11 = por %p2033_p8, %p2032_p5 }
 0x22d   : > { %p2035_p1 = pnand %p2034_p11, %p2028_p6 }
 0x22f   : > { %2038 = shalt.err (!%p2035_p1)
}
 0x230   : > { %1880 = dma.vmem_to_hbm [thread:$0]  (%p2467_p10), %s2397_s26, 128, %s2395_s29, %s1597_s5  }
 0x231 PF: > { %s1623_s4 = sand.u32 1, %s2077_s9   ;;  %p2468_p0 = scmp.ne.s32.totalorder %s2457_s22, 0 }
 0x232   : > { %p2469_p9 = scmp.ge.s32.totalorder %s2097_s14, 2  ;;  %s1624_s18 = scalar_lea.sflag [#allocation4], %s1623_s4 }
 0x234   : > { %p1891_p3 = pnand %p2469_p9, %p2468_p0 }
 0x236   : > { %2072 = dma.done.wait (!%p1891_p3), %s1624_s18, 128  }
 0x237   : > { %2074 = vsyncadd (!%p1891_p3), %s1624_s18, 4294967168  ;;  %s19_s14 = sadd.s32 1, %s2097_s14   ;;  %s2470_s9 = smov %s2081_s10 }
 0x238   : > { %p16_p7 = scmp.ge.s32.totalorder %s19_s14, 4   ;;  %s2471_s10 = smov %s2085_s11 }
 0x239   : > { %s2472_s11 = smov %s2240_s25  ;;  %s2473_s12 = smov %s2093_s13 }
 0x23a   : > { %s2474_s13 = smov %s2476_s28  ;;  %18 = sbr.rel (!%p16_p7) target bundleno = 7 (0x7), region = 77 }
 0x241   :  { %1629 = vsyncpa [#allocation3], 1 }
 0x242   :  { %1631 = vsyncpa [#allocation3 + $0x1], 1 }
 0x243   :  { %1632 = vsyncpa [#allocation6], 1 }
 0x244   :  { %1633 = vsyncpa [#allocation4], 1 }
 0x245   :  { %1635 = vsyncpa [#allocation4 + $0x1], 1 }

// kernel: vn_linear_leaky_relu.3
= control target key start
LH: loop header
LB: loop body
LE: loop exit
PB: predicated region body
PF: predicated region fallthrough
CT: control target
= control target key end

     0   :  { %10 = vsyncpa [#allocation3], 0  ;;  %s4734_s0 = inlined_call_operand.hbm [shape: f32[2,4,3,64], index: 0, kind: input, shape index: {}]   ;;  %s4735_s1 = inlined_call_operand.hbm [shape: f32[8,4], index: 1, kind: input, shape index: {}]   ;;  %s4736_s2 = inlined_call_operand.hbm [shape: f32[8,4], index: 2, kind: input, shape index: {}]   ;;  %s4737_s3 = inlined_call_operand.hbm [shape: f32[8,1], index: 3, kind: input, shape index: {}]   ;;  %s4738_s4 = inlined_call_operand.hbm [shape: f32[8,1], index: 4, kind: input, shape index: {}]   ;;  %s4739_s5 = inlined_call_operand.hbm [shape: f32[2,8,3,64], index: 5, kind: output, shape index: {}]  }
   0x1   :  { %12 = vsyncpa [#allocation3 + $0x1], 0 }
   0x2   :  { %13 = vsyncpa [#allocation6], 0 }
   0x3   :  { %14 = vsyncpa [#allocation9], 0 }
   0x4   :  { %15 = vsyncpa [#allocation4], 0 }
   0x5   :  { %17 = vsyncpa [#allocation4 + $0x1], 0  ;;  %s4165_s18 = smov 0   ;;  %s4167_s19 = smov 0  }
   0x6   :  { %s4169_s20 = smov 0   ;;  %s4171_s21 = smov 0  }
   0x7   :  { %s4173_s22 = smov 0   ;;  %s4175_s23 = smov 0  }
   0x8 LB: > { %s3432_s24 = sadd.s32 4294967295, %s4119_s23   ;;  %s3433_s25 = sadd.s32 4294967294, %s4119_s23   ;;  %s4119_s23 = sphi %s4175_s23, %s23_s23   ;;  %s4115_s22 = sphi %s4173_s22, %s4763_s22   ;;  %s4111_s21 = sphi %s4171_s21, %s4762_s21   ;;  %s4107_s20 = sphi %s4169_s20, %s4761_s20   ;;  %s4103_s19 = sphi %s4167_s19, %s4760_s19   ;;  %s4099_s18 = sphi %s4165_s18, %s4759_s18  }
   0x9   : > { %p57_p0 = scmp.ne.s32.totalorder %s4103_s19, %s4099_s18  ;;  %p4199_p1 = scmp.eq.s32.totalorder %s3432_s24, 0 }
   0xa   : > { %p4203_p2 = scmp.eq.s32.totalorder %s3432_s24, 1  ;;  %p173_p3 = scmp.eq.s32.totalorder %s3433_s25, 1 }
   0xb   : > { %s4744_s26 = scalar_select %p4199_p1, 1, 0 }
   0xc   : > { %s4745_s27 = scalar_select %p4203_p2, 1, 0 }
   0xd   : > { %p4209_p4 = por %p4199_p1, %p57_p0  ;;  %p3434_p5 = scmp.ge.s32.totalorder %s4119_s23, 1 }
   0xe   : > { %p4214_p6 = por %p173_p3, %p57_p0  ;;  %p180_p7 = scmp.lt.s32.totalorder %s4119_s23, 3 }
   0xf   : > { %s4746_s28 = scalar_select %p4209_p4, 1, 0 }
  0x10   : > { %s4747_s29 = scalar_select %p4214_p6, 1, 0 }
  0x11   : > { %p4219_p8 = pnand %p3434_p5, %p180_p7  ;;  %s4121_s6 = smov [#allocation5]  }
  0x12   : > { %s193_s7 = sshll.u32 %s4121_s6, 4  ;;  %s4122_s8 = smov [#allocation8]   ;;  %s194_s7 = int_to_ptr.vmem [resolvable:$true] %s193_s7 }
  0x13   : > { %s4748_s30 = scalar_select %p4219_p8, 1, 0 }
  0x14   : > { %p3789_p10 = pneg %p4219_p8  ;;  %s215_s9 = sshll.u32 %s4122_s8, 4  ;;  %s4232_s9 = int_to_ptr.vmem [resolvable:$true] %s215_s9 }
  0x15   : > { %s4123_s11 = smov [#allocation7]   ;;  %s3887_s15 = scalar_lea.hbm %s4735_s1, 128 }
  0x16   : > { %p4228_p11 = pnand %p3789_p10, %p4199_p1  ;;  %s204_s12 = sshll.u32 %s4123_s11, 4  ;;  %s4234_s12 = int_to_ptr.vmem [resolvable:$true] %s204_s12 }
  0x17   : > { %p3888_p12 = scmp.ne.s32.totalorder %s4735_s1, %s3887_s15  ;;  %p3894_p5 = scmp.lt.u32.totalorder %s3887_s15, %s4735_s1 }
  0x18   : > { %p4244_p13 = pneg %p4228_p11 }
  0x1a   : > { %p3890_p0 = pnand %p4244_p13, %p3888_p12 }
  0x1c   : > { %p3891_p3 = pneg %p3890_p0 }
  0x1e   : > { %p3896_p7 = pnand %p3894_p5, %p3891_p3 }
  0x20   : > { %3899 = shalt.err (!%p3896_p7)
}
  0x21   : > { %s3900_s8 = scalar_lea.vmem %s194_s7, 128  ;;  %p3908_p1 = scmp.lt.s32.totalorder %s194_s7, %s194_s7 }
  0x22   : > { %p3901_p10 = scmp.ne.s32.totalorder %s194_s7, %s3900_s8  ;;  %p3909_p4 = scmp.lt.s32.totalorder %s3900_s8, %s3900_s8 }
  0x24   : > { %p3903_p9 = pnand %p3901_p10, %p4244_p13  ;;  %p3910_p8 = por %p3909_p4, %p3908_p1 }
  0x26   : > { %p3904_p6 = pneg %p3903_p9 }
  0x28   : > { %p3911_p2 = pnand %p3910_p8, %p3904_p6 }
  0x2a   : > { %3914 = shalt.err (!%p3911_p2)
}
  0x2b   : > { %3792 = dma.hbm_to_vmem [thread:$0]  (!%p4228_p11), %s4735_s1, 128, %s194_s7, [#allocation6]  }
  0x2c   : > { %s3915_s16 = scalar_lea.hbm %s4737_s3, 128 }
  0x2d   : > { %p3916_p9 = scmp.ne.s32.totalorder %s4737_s3, %s3915_s16  ;;  %p3922_p2 = scmp.lt.u32.totalorder %s3915_s16, %s4737_s3 }
  0x2f   : > { %p3918_p12 = pnand %p3916_p9, %p4244_p13 }
  0x31   : > { %p3919_p1 = pneg %p3918_p12 }
  0x33   : > { %p3924_p4 = pnand %p3922_p2, %p3919_p1 }
  0x35   : > { %3927 = shalt.err (!%p3924_p4)
}
  0x36   : > { %s3928_s7 = scalar_lea.vmem %s4232_s9, 128  ;;  %p3936_p3 = scmp.lt.s32.totalorder %s4232_s9, %s4232_s9 }
  0x37   : > { %p3929_p6 = scmp.ne.s32.totalorder %s4232_s9, %s3928_s7  ;;  %p3937_p5 = scmp.lt.s32.totalorder %s3928_s7, %s3928_s7 }
  0x39   : > { %p3931_p8 = pnand %p3929_p6, %p4244_p13  ;;  %p3938_p7 = por %p3937_p5, %p3936_p3 }
  0x3b   : > { %p3932_p0 = pneg %p3931_p8 }
  0x3d   : > { %p3939_p10 = pnand %p3938_p7, %p3932_p0 }
  0x3f   : > { %3942 = shalt.err (!%p3939_p10)
}
  0x40   : > { %3798 = dma.hbm_to_vmem [thread:$0]  (!%p4228_p11), %s4737_s3, 128, %s4232_s9, [#allocation9]  }
  0x41   : > { %s3943_s16 = scalar_lea.hbm %s4736_s2, 128 }
  0x42   : > { %p3944_p9 = scmp.ne.s32.totalorder %s4736_s2, %s3943_s16  ;;  %p3950_p2 = scmp.lt.u32.totalorder %s3943_s16, %s4736_s2 }
  0x44   : > { %p3946_p12 = pnand %p3944_p9, %p4244_p13 }
  0x46   : > { %p3947_p1 = pneg %p3946_p12 }
  0x48   : > { %p3952_p4 = pnand %p3950_p2, %p3947_p1 }
  0x4a   : > { %3955 = shalt.err (!%p3952_p4)
}
  0x4b   : > { %s3956_s9 = scalar_lea.vmem %s4234_s12, 128  ;;  %p3964_p3 = scmp.lt.s32.totalorder %s4234_s12, %s4234_s12 }
  0x4c   : > { %p3957_p6 = scmp.ne.s32.totalorder %s4234_s12, %s3956_s9  ;;  %p3965_p5 = scmp.lt.s32.totalorder %s3956_s9, %s3956_s9 }
  0x4e   : > { %p3959_p8 = pnand %p3957_p6, %p4244_p13  ;;  %p3966_p7 = por %p3965_p5, %p3964_p3 }
  0x50   : > { %p3960_p0 = pneg %p3959_p8 }
  0x52   : > { %p3967_p10 = pnand %p3966_p7, %p3960_p0 }
  0x54   : > { %3970 = shalt.err (!%p3967_p10)
}
  0x55   : > { %3795 = dma.hbm_to_vmem [thread:$0]  (!%p4228_p11), %s4736_s2, 128, %s4234_s12, [#allocation6]  }
  0x56   : > { %s4124_s13 = smov [#allocation10]   ;;  %s3971_s17 = scalar_lea.hbm %s4738_s4, 128 }
  0x57   : > { %s226_s14 = sshll.u32 %s4124_s13, 4  ;;  %p3972_p9 = scmp.ne.s32.totalorder %s4738_s4, %s3971_s17  ;;  %s227_s14 = int_to_ptr.vmem [resolvable:$true] %s226_s14 }
  0x58   : > { %p3978_p2 = scmp.lt.u32.totalorder %s3971_s17, %s4738_s4 }
  0x59   : > { %p3974_p12 = pnand %p3972_p9, %p4244_p13 }
  0x5b   : > { %p3975_p1 = pneg %p3974_p12 }
  0x5d   : > { %p3980_p4 = pnand %p3978_p2, %p3975_p1 }
  0x5f   : > { %3983 = shalt.err (!%p3980_p4)
}
  0x60   : > { %s3984_s12 = scalar_lea.vmem %s227_s14, 128  ;;  %p3992_p3 = scmp.lt.s32.totalorder %s227_s14, %s227_s14 }
  0x61   : > { %p3985_p6 = scmp.ne.s32.totalorder %s227_s14, %s3984_s12  ;;  %p3993_p5 = scmp.lt.s32.totalorder %s3984_s12, %s3984_s12 }
  0x63   : > { %p3987_p8 = pnand %p3985_p6, %p4244_p13  ;;  %p3994_p7 = por %p3993_p5, %p3992_p3 }
  0x65   : > { %p3988_p0 = pneg %p3987_p8 }
  0x67   : > { %p3995_p10 = pnand %p3994_p7, %p3988_p0 }
  0x69   : > { %3998 = shalt.err (!%p3995_p10)
}
  0x6a   : > { %3801 = dma.hbm_to_vmem [thread:$0]  (!%p4228_p11), %s4738_s4, 128, %s227_s14, [#allocation9]  }
  0x6b   : > { %s35_s24 = sadd.s32 1, %s4115_s22  ;;  %s44_s13 = sadd.s32 1, %s4107_s20 }
  0x6c   : > { %p37_p13 = scmp.ge.s32.totalorder %s35_s24, 2  ;;  %p51_p9 = scmp.ne.s32.totalorder %s4107_s20, %s4103_s19 }
  0x6d   : > { %p52_p12 = scmp.eq.s32.totalorder %s4119_s23, 0  ;;  %p3814_p1 = scmp.lt.s32.totalorder %s4119_s23, 2 }
  0x6e   : > { %s4765_s24 = smov (%p37_p13, %s35_s24), 0  ;;  %p4751_p4 = scmp.ne.s32.totalorder %s4745_s27, 0 }
  0x6f   : > { %p53_p2 = por %p52_p12, %p51_p9  ;;  %s39_s15 = ssub.s32 %s4115_s22, %s4765_s24 }
  0x70   : > { %p4334_p6 = por %p4751_p4, %p51_p9  ;;  %s237_s16 = sand.u32 1, %s4107_s20  }
  0x71   : > { %p42_p8 = scmp.eq.s32.totalorder %s39_s15, 0  ;;  %s3440_s14 = sshll.u32 %s237_s16, 4 }
  0x72   : > { %s3455_s17 = sshll.u32 %s4115_s22, 8  ;;  %s241_s27 = scalar_lea.vmem [#allocation2], %s3440_s14 }
  0x73   : > { %s4343_s25 = scalar_select %p42_p8, %s4107_s20, %s44_s13  }
  0x74   : > { %s4348_s9 = scalar_lea.hbm %s4734_s0, %s3455_s17  ;;  %s249_s12 = sshll.u32 %s241_s27, 4  ;;  %s4356_s12 = int_to_ptr.vmem [resolvable:$true] %s249_s12 }
  0x75   : > { %p4352_p11 = pnand %p3814_p1, %p53_p2  ;;  %s4358_s11 = scalar_lea.sflag [#allocation3], %s237_s16 }
  0x76   : > { %s3999_s13 = scalar_lea.hbm %s4348_s9, 256  ;;  %s4004_s17 = scalar_lea.hbm %s4734_s0, 512 }
  0x77   : > { %p4000_p0 = scmp.ne.s32.totalorder %s4348_s9, %s3999_s13  ;;  %p4001_p3 = pneg %p4352_p11 }
  0x78   : > { %p4005_p10 = scmp.lt.u32.totalorder %s4348_s9, %s4734_s0  ;;  %p4006_p13 = scmp.lt.u32.totalorder %s4004_s17, %s3999_s13 }
  0x79   : > { %p4002_p5 = pnand %p4001_p3, %p4000_p0  ;;  %p4008_p12 = scmp.lt.u32.totalorder %s3999_s13, %s4348_s9 }
  0x7a   : > { %p4007_p9 = por %p4006_p13, %p4005_p10 }
  0x7b   : > { %p4003_p7 = pneg %p4002_p5 }
  0x7c   : > { %p4009_p1 = por %p4008_p12, %p4007_p9 }
  0x7e   : > { %p4010_p2 = pnand %p4009_p1, %p4003_p7 }
  0x80   : > { %4013 = shalt.err (!%p4010_p2)
}
  0x81   : > { %s4014_s16 = scalar_lea.vmem %s4356_s12, 256  ;;  %s4125_s27 = smov [#allocation2]  }
  0x82   : > { %p4015_p4 = scmp.ne.s32.totalorder %s4356_s12, %s4014_s16  ;;  %s4019_s15 = sshll.u32 %s4125_s27, 4  ;;  %s4020_s15 = int_to_ptr.vmem [resolvable:$false] %s4019_s15 }
  0x83   : > { %s4021_s14 = scalar_lea.vmem %s4020_s15, 512  ;;  %p4022_p5 = scmp.lt.s32.totalorder %s4356_s12, %s4020_s15 }
  0x84   : > { %p4017_p8 = pnand %p4015_p4, %p4001_p3  ;;  %p4023_p10 = scmp.lt.s32.totalorder %s4021_s14, %s4014_s16 }
  0x86   : > { %p4018_p0 = pneg %p4017_p8  ;;  %p4024_p13 = por %p4023_p10, %p4022_p5 }
  0x88   : > { %p4025_p9 = pnand %p4024_p13, %p4018_p0 }
  0x8a   : > { %4028 = shalt.err (!%p4025_p9)
}
  0x8b   : > { %s4126_s13 = smov 64   ;;  %s4127_s17 = smov 4  }
  0x8c   : > { %3805 = dma.hbm_to_vmem [thread:$0]  (!%p4352_p11), %s4348_s9, 256, %s4356_s12, %s4358_s11, %s4126_s13, %s4126_s13, %s4127_s17  }
  0x8d   : > { %p4754_p3 = scmp.ne.s32.totalorder %s4748_s30, 0 }
  0x8e   : > { %s4389_s6 = sand.u32 (!%p4754_p3), 1, %s4103_s19   ;;  %p4755_p7 = scmp.ne.s32.totalorder (!%p4754_p3), %s4746_s28, 0 }
  0x8f   : > { %261 = sbr.rel (%p4754_p3) target bundleno = 597 (0x255), region = 40  ;;  %s3444_s8 = sshll.u32 (!%p4754_p3), %s4389_s6, 4 }
  0x90   : > { %s264_s16 = scalar_lea.sflag (!%p4754_p3), [#allocation3], %s4389_s6  ;;  %s267_s27 = scalar_lea.vmem (!%p4754_p3), [#allocation2], %s3444_s8 }
  0x96   : > { %4082 = dma.done.wait (%p4755_p7), %s264_s16, 256  }
  0x97   : > { %4084 = vsyncadd (%p4755_p7), %s264_s16, 4294967040  ;;  %p4756_p12 = scmp.ne.s32.totalorder %s4744_s26, 0 }
  0x99   : > { %4086 = dma.done.wait (%p4756_p12), [#allocation6], 256  }
  0x9a   : > { %4088 = vsyncadd (%p4756_p12), [#allocation6], 4294967040 }
  0x9b   : > { %4090 = dma.done.wait (%p4756_p12), [#allocation9], 256  }
  0x9c   : > { %4092 = vsyncadd (%p4756_p12), [#allocation9], 4294967040  ;;  %v4128_v0 = vmov 0.0   ;;  %vm4129_vm0 = vmmov 0   ;;  %vm321_vm1 = vcmask 1041409   ;;  %vm324_vm2 = vcmask 1042434  }
  0x9d   : > { %3529 = vmatprep.subr.mxu0 %v4128_v0  ;;  %3559 = vmatprep.subr.mxu1 %v4128_v0  ;;  %vm329_vm3 = vcmask 31744   ;;  %v4411_v1 = vld [vmem:[%s267_s27] sm:$0x7]  ;;  %v4413_v2 = vld [vmem:[%s267_s27 + $0x4] sm:$0x7]  ;;  %v315_v8 = vld [vmem:[#allocation7] sm:$0xff] }
  0x9e   : > { %3531 = vmatprep.mubr.msk.f32.mxu0 %vm4129_vm0, %v4128_v0  ;;  %3561 = vmatprep.mubr.msk.f32.mxu1 %vm4129_vm0, %v4128_v0  ;;  %v4415_v3 = vld [vmem:[%s267_s27 + $0x8] sm:$0x7]  ;;  %v4417_v4 = vld [vmem:[%s267_s27 + $0xc] sm:$0x7]  ;;  %v320_v5 = vrot.slane %v4413_v2, 7  ;;  %v314_v7 = vld [vmem:[#allocation5] sm:$0xff] }
  0x9f   : > { %v323_v6 = vrot.slane %v4415_v3, 6  ;;  %v326_v9 = vrot.slane %v4417_v4, 5  ;;  %vm327_vm4 = vcmask 1043459   ;;  %v331_v10 = vsel %vm329_vm3, %v314_v7, 0  ;;  %v3047_v37 = vld [vmem:[#allocation10] sm:$0xff]  ;;  %v3046_v40 = vld [vmem:[#allocation8] sm:$0xff] }
  0xa0   : > { %v783_v11 = vsel %vm329_vm3, %v315_v8, 0  ;;  %v322_v12 = vsel %vm321_vm1, %v320_v5, %v4411_v1  ;;  %vm333_vm5 = vcmask 1043456   ;;  %v4424_v13 = vand.u32 4294901760, %v331_v10  ;;  %s3449_s26 = sshll.u32 %s4389_s6, 5  ;;  %s3456_s30 = sshll.u32 %s4111_s21, 9 }
  0xa1   : > { %v4426_v14 = vand.u32 4294901760, %v783_v11  ;;  %v325_v15 = vsel %vm324_vm2, %v323_v6, %v322_v12  ;;  %v2131_v16 = vrot.slane %v4411_v1, 2  ;;  %v2132_v21 = vrot.slane %v4413_v2, 1  ;;  %s4628_s28 = scalar_lea.vmem [#allocation11], %s3449_s26  ;;  %s4665_s7 = scalar_lea.hbm %s4739_s5, %s3456_s30 }
  0xa2   : > { %v328_v17 = vsel %vm327_vm4, %v326_v9, %v325_v15  ;;  %v4432_v18 = vsub.f32 %v331_v10, %v4424_v13  ;;  %v2135_v25 = vrot.slane %v4417_v4, 7  ;;  %v4130_v39 = vmov 0   ;;  %s3309_s9 = sshll.u32 %s4628_s28, 4  ;;  %s3295_s11 = scalar_lea.sflag [#allocation4], %s4389_s6  ;;  %s4667_s9 = int_to_ptr.vmem [resolvable:$true] %s3309_s9 }
  0xa3   : > { %v4435_v19 = vsub.f32 %v783_v11, %v4426_v14  ;;  %v334_v20 = vsel %vm333_vm5, %v328_v17, 0  ;;  %v2133_v26 = vsel %vm321_vm1, %v2132_v21, %v2131_v16  ;;  %3880 = vset.pattern.permute.xlu0 %v4130_v39  ;;  %v1231_v41 = vrot.slane %v4411_v1, 1  ;;  %s4029_s15 = scalar_lea.vmem %s4667_s9, 512  ;;  %s4132_s14 = smov [#allocation11]  }
  0xa4   : > { %v4439_v22 = vand.u32 4294901760, %v334_v20  ;;  %v4442_v23 = vand.u32 4294901760, %v4432_v18  ;;  %v2134_v30 = vsel %vm324_vm2, %v4415_v3, %v2133_v26  ;;  %3050 = vperm.xlu0 %3880, %v3047_v37   ;;  %v1233_v42 = vrot.slane %v4415_v3, 7  ;;  %p4030_p11 = scmp.ne.s32.totalorder %s4667_s9, %s4029_s15  ;;  %s4033_s13 = sshll.u32 %s4132_s14, 4  ;;  %s4034_s13 = int_to_ptr.vmem [resolvable:$false] %s4033_s13 }
  0xa5   : > { %v4445_v24 = vand.u32 4294901760, %v4435_v19  ;;  %v2136_v34 = vsel %vm327_vm4, %v2135_v25, %v2134_v30  ;;  %v1232_v43 = vsel %vm321_vm1, %v4413_v2, %v1231_v41  ;;  %v1235_v44 = vrot.slane %v4417_v4, 6  ;;  %s4035_s17 = scalar_lea.vmem %s4034_s13, 1024  ;;  %p4036_p4 = scmp.lt.s32.totalorder %s4667_s9, %s4034_s13 }
  0xa6   : > { %3530 = vmatpush3.msra.mxu0 %v4439_v22  ;;  %3560 = vmatpush3.msra.mxu1 %v4439_v22  ;;  %v405_v27 = vsub.f32 %v4432_v18, %v4442_v23  ;;  %v414_v29 = vsub.f32 %v334_v20, %v4439_v22  ;;  %v4466_v35 = vsel %vm333_vm5, %v2136_v34, 0  ;;  %v1234_v45 = vsel %vm324_vm2, %v1233_v42, %v1232_v43  ;;  %p4031_p1 = pnand %p4030_p11, %p4334_p6  ;;  %p4037_p8 = scmp.lt.s32.totalorder %s4035_s17, %s4029_s15 }
  0xa7   : > { %v854_v28 = vsub.f32 %v4435_v19, %v4445_v24  ;;  %3534 = vmatprep.subr.mxu0 %v4128_v0  ;;  %3564 = vmatprep.subr.mxu1 %v4128_v0  ;;  %v1236_v46 = vsel %vm327_vm4, %v1235_v44, %v1234_v45  ;;  %v2140_v53 = vand.u32 4294901760, %v4466_v35  ;;  %v4131_v37 = vmov 1966171168  }
  0xa8   : > { %v4460_v31 = vand.u32 4294901760, %v405_v27  ;;  %v415_v33 = vand.u32 4294901760, %v414_v29  ;;  %3056 = vperm.xlu0 %3880, %v3046_v40   ;;  %v1237_v47 = vsel %vm333_vm5, %v1236_v46, 0  ;;  %v3088_v39 = vlaneseq  ;;  %p4032_p2 = pneg %p4031_p1  ;;  %p4038_p0 = por %p4037_p8, %p4036_p4 }
  0xa9   : > { %v4462_v32 = vand.u32 4294901760, %v854_v28  ;;  %v4506_v48 = vand.u32 4294901760, %v1237_v47  ;;  %v2217_v54 = vsub.f32 %v4466_v35, %v2140_v53  ;;  %vm3141_vm9 = vcmask 516096  }
  0xaa   : > { %3532 = vmatmul.mubr.f32.vlgmr.msra.gmra.mrb[0].mxu0 %v4460_v31  ;;  %v416_v36 = vsub.f32 %v414_v29, %v415_v33  ;;  %v3089_v45 = vshrl.u32 %v3088_v39, 7  ;;  %p4039_p5 = pnand %p4038_p0, %p4032_p2 }
  0xab   : > { %3562 = vmatmul.mubr.f32.vlgmr.msra.gmra.mrb[0].mxu1 %v4462_v32  ;;  %3536 = vmatprep.mubr.msk.f32.mxu0 %vm4129_vm0, %v4128_v0  ;;  %v1317_v49 = vsub.f32 %v1237_v47, %v4506_v48  ;;  %v2218_v55 = vand.u32 4294901760, %v2217_v54 }
  0xac   : > { %3566 = vmatprep.mubr.msk.f32.mxu1 %vm4129_vm0, %v4128_v0  ;;  %v417_v38 = vand.u32 4294901760, %v416_v36 }
  0xad   : > { %v1318_v50 = vand.u32 4294901760, %v1317_v49  ;;  %v2219_v56 = vsub.f32 %v2217_v54, %v2218_v55 }
  0xae   : > { %3535 = vmatpush3.msra.mxu0 %v417_v38  ;;  %3565 = vmatpush3.msra.mxu1 %v417_v38  ;;  %v3086_v38 = vunpack.c.l.s4 %v4131_v37 }
  0xaf   : > { %3539 = vmatprep.subr.mxu0 %v4128_v0  ;;  %3569 = vmatprep.subr.mxu1 %v4128_v0  ;;  %v1319_v51 = vsub.f32 %v1317_v49, %v1318_v50  ;;  %v2220_v57 = vand.u32 4294901760, %v2219_v56 }
  0xb0   : > { %v3087_v44 = vunpack.c.0.s8 %v3086_v38 }
  0xb1   : > { %v1320_v52 = vand.u32 4294901760, %v1319_v51 }
  0xb2   : > { %3537 = vmatmul.mubr.f32.vlgmr.msra.gmra.mrb[0].mxu0 %v4424_v13 }
  0xb3   : > { %3567 = vmatmul.mubr.f32.vlgmr.msra.gmra.mrb[0].mxu1 %v4426_v14  ;;  %3540 = vmatpush3.msra.mxu0 %v414_v29 }
  0xb4   : > { %3541 = vmatprep.mubr.msk.f32.mxu0 %vm4129_vm0, %v4128_v0  ;;  %3570 = vmatpush3.msra.mxu1 %v414_v29 }
  0xb5   : > { %3571 = vmatprep.mubr.msk.f32.mxu1 %vm4129_vm0, %v4128_v0  ;;  %3544 = vmatprep.subr.mxu0 %v4128_v0 }
  0xb6   : > { %3574 = vmatprep.subr.mxu1 %v4128_v0 }
  0xba   : > { %3542 = vmatmul.mubr.f32.vlgmr.msra.gmra.mrb[0].mxu0 %v4432_v18 }
  0xbb   : > { %3572 = vmatmul.mubr.f32.vlgmr.msra.gmra.mrb[0].mxu1 %v4435_v19  ;;  %3545 = vmatpush3.msra.mxu0 %v4439_v22 }
  0xbc   : > { %3546 = vmatprep.mubr.msk.f32.mxu0 %vm4129_vm0, %v4128_v0  ;;  %3575 = vmatpush3.msra.mxu1 %v4439_v22 }
  0xbd   : > { %3576 = vmatprep.mubr.msk.f32.mxu1 %vm4129_vm0, %v4128_v0  ;;  %3549 = vmatprep.subr.mxu0 %v4128_v0 }
  0xbe   : > { %3579 = vmatprep.subr.mxu1 %v4128_v0 }
  0xc2   : > { %3547 = vmatmul.mubr.f32.vlgmr.msra.gmra.mrb[0].mxu0 %v4442_v23 }
  0xc3   : > { %3577 = vmatmul.mubr.f32.vlgmr.msra.gmra.mrb[0].mxu1 %v4445_v24  ;;  %3550 = vmatpush3.msra.mxu0 %v415_v33 }
  0xc4   : > { %3551 = vmatprep.mubr.msk.f32.mxu0 %vm4129_vm0, %v4128_v0  ;;  %3580 = vmatpush3.msra.mxu1 %v415_v33 }
  0xc5   : > { %3581 = vmatprep.mubr.msk.f32.mxu1 %vm4129_vm0, %v4128_v0  ;;  %3554 = vmatprep.subr.mxu0 %v4128_v0 }
  0xc6   : > { %3584 = vmatprep.subr.mxu1 %v4128_v0 }
  0xca   : > { %3552 = vmatmul.mubr.f32.vlgmr.msra.gmra.mrb[0].mxu0 %v4424_v13 }
  0xcb   : > { %3582 = vmatmul.mubr.f32.vlgmr.msra.gmra.mrb[0].mxu1 %v4426_v14  ;;  %3555 = vmatpush3.msra.mxu0 %v4439_v22 }
  0xcc   : > { %3556 = vmatprep.mubr.msk.f32.mxu0 %vm4129_vm0, %v4128_v0  ;;  %3585 = vmatpush3.msra.mxu1 %v4439_v22 }
  0xcd   : > { %3586 = vmatprep.mubr.msk.f32.mxu1 %vm4129_vm0, %v4128_v0  ;;  %3589 = vmatprep.subr.mxu0 %v4128_v0 }
  0xce   : > { %3619 = vmatprep.subr.mxu1 %v4128_v0 }
  0xd2   : > { %3557 = vmatmul.mubr.f32.vlgmr.msra.gmra.mrb[0].mxu0 %v4424_v13 }
  0xd3   : > { %3587 = vmatmul.mubr.f32.vlgmr.msra.gmra.mrb[0].mxu1 %v4426_v14  ;;  %3590 = vmatpush3.msra.mxu0 %v4506_v48 }
  0xd4   : > { %3591 = vmatprep.mubr.msk.f32.mxu0 %vm4129_vm0, %v4128_v0  ;;  %3620 = vmatpush3.msra.mxu1 %v4506_v48 }
  0xd5   : > { %3621 = vmatprep.mubr.msk.f32.mxu1 %vm4129_vm0, %v4128_v0  ;;  %3594 = vmatprep.subr.mxu0 %v4128_v0 }
  0xd6   : > { %3624 = vmatprep.subr.mxu1 %v4128_v0  ;;  %3592 = vmatmul.mubr.f32.vlgmr.msra.gmra.mrb[2].mxu0 %v4460_v31 }
  0xd7   : > { %3622 = vmatmul.mubr.f32.vlgmr.msra.gmra.mrb[2].mxu1 %v4462_v32  ;;  %3595 = vmatpush3.msra.mxu0 %v1320_v52 }
  0xd8   : > { %3596 = vmatprep.mubr.msk.f32.mxu0 %vm4129_vm0, %v4128_v0  ;;  %3625 = vmatpush3.msra.mxu1 %v1320_v52 }
  0xd9   : > { %3626 = vmatprep.mubr.msk.f32.mxu1 %vm4129_vm0, %v4128_v0  ;;  %3599 = vmatprep.subr.mxu0 %v4128_v0 }
  0xda   : > { %3629 = vmatprep.subr.mxu1 %v4128_v0 }
  0xde   : > { %3597 = vmatmul.mubr.f32.vlgmr.msra.gmra.mrb[2].mxu0 %v4424_v13 }
  0xdf   : > { %3627 = vmatmul.mubr.f32.vlgmr.msra.gmra.mrb[2].mxu1 %v4426_v14  ;;  %3600 = vmatpush3.msra.mxu0 %v1317_v49 }
  0xe0   : > { %3601 = vmatprep.mubr.msk.f32.mxu0 %vm4129_vm0, %v4128_v0  ;;  %3630 = vmatpush3.msra.mxu1 %v1317_v49 }
  0xe1   : > { %3631 = vmatprep.mubr.msk.f32.mxu1 %vm4129_vm0, %v4128_v0  ;;  %3604 = vmatprep.subr.mxu0 %v4128_v0 }
  0xe2   : > { %3634 = vmatprep.subr.mxu1 %v4128_v0 }
  0xe6   : > { %3602 = vmatmul.mubr.f32.vlgmr.msra.gmra.mrb[2].mxu0 %v4432_v18 }
  0xe7   : > { %3632 = vmatmul.mubr.f32.vlgmr.msra.gmra.mrb[2].mxu1 %v4435_v19  ;;  %3605 = vmatpush3.msra.mxu0 %v4506_v48 }
  0xe8   : > { %3606 = vmatprep.mubr.msk.f32.mxu0 %vm4129_vm0, %v4128_v0  ;;  %3635 = vmatpush3.msra.mxu1 %v4506_v48 }
  0xe9   : > { %3636 = vmatprep.mubr.msk.f32.mxu1 %vm4129_vm0, %v4128_v0  ;;  %3609 = vmatprep.subr.mxu0 %v4128_v0 }
  0xea   : > { %3639 = vmatprep.subr.mxu1 %v4128_v0 }
  0xee   : > { %3607 = vmatmul.mubr.f32.vlgmr.msra.gmra.mrb[2].mxu0 %v4442_v23 }
  0xef   : > { %3637 = vmatmul.mubr.f32.vlgmr.msra.gmra.mrb[2].mxu1 %v4445_v24  ;;  %3610 = vmatpush3.msra.mxu0 %v1318_v50 }
  0xf0   : > { %3611 = vmatprep.mubr.msk.f32.mxu0 %vm4129_vm0, %v4128_v0  ;;  %3640 = vmatpush3.msra.mxu1 %v1318_v50 }
  0xf1   : > { %3641 = vmatprep.mubr.msk.f32.mxu1 %vm4129_vm0, %v4128_v0  ;;  %3614 = vmatprep.subr.mxu0 %v4128_v0 }
  0xf2   : > { %3644 = vmatprep.subr.mxu1 %v4128_v0 }
  0xf6   : > { %3612 = vmatmul.mubr.f32.vlgmr.msra.gmra.mrb[2].mxu0 %v4424_v13 }
  0xf7   : > { %3642 = vmatmul.mubr.f32.vlgmr.msra.gmra.mrb[2].mxu1 %v4426_v14  ;;  %3615 = vmatpush3.msra.mxu0 %v4506_v48 }
  0xf8   : > { %3616 = vmatprep.mubr.msk.f32.mxu0 %vm4129_vm0, %v4128_v0  ;;  %3645 = vmatpush3.msra.mxu1 %v4506_v48 }
  0xf9   : > { %3646 = vmatprep.mubr.msk.f32.mxu1 %vm4129_vm0, %v4128_v0  ;;  %3649 = vmatprep.subr.mxu0 %v4128_v0 }
  0xfa   : > { %3679 = vmatprep.subr.mxu1 %v4128_v0 }
  0xfe   : > { %3617 = vmatmul.mubr.f32.vlgmr.msra.gmra.mrb[2].mxu0 %v4424_v13 }
  0xff   : > { %3647 = vmatmul.mubr.f32.vlgmr.msra.gmra.mrb[2].mxu1 %v4426_v14  ;;  %3650 = vmatpush3.msra.mxu0 %v2140_v53 }
 0x100   : > { %3651 = vmatprep.mubr.msk.f32.mxu0 %vm4129_vm0, %v4128_v0  ;;  %3680 = vmatpush3.msra.mxu1 %v2140_v53 }
 0x101   : > { %3681 = vmatprep.mubr.msk.f32.mxu1 %vm4129_vm0, %v4128_v0  ;;  %3654 = vmatprep.subr.mxu0 %v4128_v0 }
 0x102   : > { %3684 = vmatprep.subr.mxu1 %v4128_v0  ;;  %3652 = vmatmul.mubr.f32.vlgmr.msra.gmra.mrb[4].mxu0 %v4460_v31 }
 0x103   : > { %3682 = vmatmul.mubr.f32.vlgmr.msra.gmra.mrb[4].mxu1 %v4462_v32  ;;  %3655 = vmatpush3.msra.mxu0 %v2220_v57 }
 0x104   : > { %3656 = vmatprep.mubr.msk.f32.mxu0 %vm4129_vm0, %v4128_v0  ;;  %3685 = vmatpush3.msra.mxu1 %v2220_v57 }
 0x105   : > { %3686 = vmatprep.mubr.msk.f32.mxu1 %vm4129_vm0, %v4128_v0  ;;  %3659 = vmatprep.subr.mxu0 %v4128_v0 }
 0x106   : > { %3689 = vmatprep.subr.mxu1 %v4128_v0 }
 0x10a   : > { %3657 = vmatmul.mubr.f32.vlgmr.msra.gmra.mrb[4].mxu0 %v4424_v13 }
 0x10b   : > { %3687 = vmatmul.mubr.f32.vlgmr.msra.gmra.mrb[4].mxu1 %v4426_v14  ;;  %3660 = vmatpush3.msra.mxu0 %v2217_v54 }
 0x10c   : > { %3661 = vmatprep.mubr.msk.f32.mxu0 %vm4129_vm0, %v4128_v0  ;;  %3690 = vmatpush3.msra.mxu1 %v2217_v54 }
 0x10d   : > { %3691 = vmatprep.mubr.msk.f32.mxu1 %vm4129_vm0, %v4128_v0  ;;  %3664 = vmatprep.subr.mxu0 %v4128_v0 }
 0x10e   : > { %3694 = vmatprep.subr.mxu1 %v4128_v0 }
 0x112   : > { %3662 = vmatmul.mubr.f32.vlgmr.msra.gmra.mrb[4].mxu0 %v4432_v18 }
 0x113   : > { %3692 = vmatmul.mubr.f32.vlgmr.msra.gmra.mrb[4].mxu1 %v4435_v19  ;;  %3665 = vmatpush3.msra.mxu0 %v2140_v53 }
 0x114   : > { %3666 = vmatprep.mubr.msk.f32.mxu0 %vm4129_vm0, %v4128_v0  ;;  %3695 = vmatpush3.msra.mxu1 %v2140_v53 }
 0x115   : > { %3696 = vmatprep.mubr.msk.f32.mxu1 %vm4129_vm0, %v4128_v0  ;;  %3669 = vmatprep.subr.mxu0 %v4128_v0 }
 0x116   : > { %3699 = vmatprep.subr.mxu1 %v4128_v0 }
 0x11a   : > { %3667 = vmatmul.mubr.f32.vlgmr.msra.gmra.mrb[4].mxu0 %v4442_v23 }
 0x11b   : > { %3697 = vmatmul.mubr.f32.vlgmr.msra.gmra.mrb[4].mxu1 %v4445_v24  ;;  %3670 = vmatpush3.msra.mxu0 %v2218_v55 }
 0x11c   : > { %3671 = vmatprep.mubr.msk.f32.mxu0 %vm4129_vm0, %v4128_v0  ;;  %3700 = vmatpush3.msra.mxu1 %v2218_v55  ;;  %v3090_v55 = vsub.s32 %v3087_v44, %v3089_v45 }
 0x11d   : > { %3701 = vmatprep.mubr.msk.f32.mxu1 %vm4129_vm0, %v4128_v0  ;;  %3674 = vmatprep.subr.mxu0 %v4128_v0 }
 0x11e   : > { %3704 = vmatprep.subr.mxu1 %v4128_v0 }
 0x122   : > { %3672 = vmatmul.mubr.f32.vlgmr.msra.gmra.mrb[4].mxu0 %v4424_v13 }
 0x123   : > { %3702 = vmatmul.mubr.f32.vlgmr.msra.gmra.mrb[4].mxu1 %v4426_v14  ;;  %3675 = vmatpush3.msra.mxu0 %v2140_v53  ;;  %v3051_v22 = vpop.permute.xlu0 %3050 }
 0x124   : > { %3676 = vmatprep.mubr.msk.f32.mxu0 %vm4129_vm0, %v4128_v0  ;;  %3705 = vmatpush3.msra.mxu1 %v2140_v53 }
 0x125   : > { %3706 = vmatprep.mubr.msk.f32.mxu1 %vm4129_vm0, %v4128_v0 }
 0x127   : > { %v3057_v26 = vpop.permute.xlu0 %3056 }
 0x12a   : > { %3677 = vmatmul.mubr.f32.vlgmr.msra.gmra.mrb[4].mxu0 %v4424_v13 }
 0x12b   : > { %3707 = vmatmul.mubr.f32.vlgmr.msra.gmra.mrb[4].mxu1 %v4426_v14 }
 0x1a5   : > { %v778_v58 = vpop.f32.mrb[0].mxu0 }
 0x1a6   : > { %v1227_v59 = vpop.f32.mrb[0].mxu1  ;;  %v3558_v60 = vpop.f32.mrb[1].mxu0  ;;  %v3031_v1 = vmul.f32 %v778_v58, %v778_v58 }
 0x1a7   : > { %v3588_v61 = vpop.f32.mrb[1].mxu1  ;;  %v3068_v2 = vmul.f32 %v1227_v59, %v1227_v59 }
 0x1d1   : > { %v1681_v62 = vpop.f32.mrb[2].mxu0 }
 0x1d2   : > { %v2127_v63 = vpop.f32.mrb[2].mxu1  ;;  %v3032_v3 = vmul.f32 %v1681_v62, %v1681_v62  ;;  %v3618_v5 = vpop.f32.mrb[3].mxu0 }
 0x1d3   : > { %v3069_v4 = vmul.f32 %v2127_v63, %v2127_v63  ;;  %v3648_v6 = vpop.f32.mrb[3].mxu1 }
 0x1d4   : > { %v3033_v7 = vadd.f32 %v3032_v3, %v3031_v1 }
 0x1d5   : > { %v3070_v8 = vadd.f32 %v3069_v4, %v3068_v2 }
 0x1fd   : > { %v2581_v9 = vpop.f32.mrb[4].mxu0 }
 0x1fe   : > { %v3027_v0 = vpop.f32.mrb[4].mxu1  ;;  %v3034_v10 = vmul.f32 %v2581_v9, %v2581_v9  ;;  %v3678_v12 = vpop.f32.mrb[5].mxu0 }
 0x1ff   : > { %v3071_v11 = vmul.f32 %v3027_v0, %v3027_v0  ;;  %v3708_v13 = vpop.f32.mrb[5].mxu1 }
 0x200   : > { %v3035_v14 = vadd.f32 %v3034_v10, %v3033_v7 }
 0x201   : > { %v3072_v15 = vadd.f32 %v3071_v11, %v3070_v8 }
 0x202   : > { %3881 = vrsqrt.f32 %v3035_v14  ;;  %vm3038_vm6 = vcmp.eq.f32.partialorder %v3035_v14, inf  ;;  %v3041_v18 = vand.u32 2147483648, %v3035_v14  ;;  %vm3040_vm7 = vcmp.eq.f32.partialorder %v3035_v14, 0.0 }
 0x203   : > { %v3073_v23 = vadd.f32 1e-06, %v3072_v15 }
 0x20c   : > { %v3882_v16 = vpop.eup %3881 }
 0x20d   : > { %v3037_v17 = vmul.f32 %v3882_v16, %v3035_v14 }
 0x20f   : > { %v3039_v19 = vsel %vm3038_vm6, %v3035_v14, %v3037_v17 }
 0x210   : > { %v3042_v20 = vsel %vm3040_vm7, %v3041_v18, %v3039_v19 }
 0x211   : > { %v3043_v21 = vadd.f32 1e-06, %v3042_v20 }
 0x213   : > { %3883 = vrcp.f32 %v3043_v21 }
 0x214   : > { %3885 = vrcp.f32 %v3073_v23 }
 0x21d   : > { %v3884_v24 = vpop.eup %3883 }
 0x21e   : > { %v3053_v25 = vmul.f32 %v3884_v24, %v3051_v22  ;;  %v3886_v36 = vpop.eup %3885 }
 0x220   : > { %v3059_v27 = vadd.f32 %v3057_v26, %v3053_v25 }
 0x222   : > { %v3060_v28 = vmul.f32 %v3059_v27, %v778_v58  ;;  %v3061_v29 = vmul.f32 %v3059_v27, %v1681_v62  ;;  %v3062_v30 = vmul.f32 %v3059_v27, %v2581_v9 }
 0x224   : > { %v3063_v31 = vmul.f32 %v3060_v28, %v1227_v59  ;;  %v3064_v32 = vmul.f32 %v3061_v29, %v2127_v63  ;;  %v3066_v33 = vmul.f32 %v3062_v30, %v3027_v0  ;;  %v3079_v49 = vmul.f32 0.2, %v3060_v28 }
 0x225   : > { %v3152_v50 = vmul.f32 0.2, %v3061_v29  ;;  %v3224_v53 = vmul.f32 0.2, %v3062_v30 }
 0x226   : > { %v3065_v34 = vadd.f32 %v3064_v32, %v3063_v31 }
 0x228   : > { %v3067_v35 = vadd.f32 %v3066_v33, %v3065_v34 }
 0x22a   : > { %v3075_v40 = vmul.f32 %v3886_v36, %v3067_v35  ;;  %vm3076_vm8 = vcmp.ge.f32.partialorder %v3067_v35, 0.0 }
 0x22c   : > { %v3077_v41 = vmul.f32 %v3075_v40, %v1227_v59  ;;  %v3150_v42 = vmul.f32 %v3075_v40, %v2127_v63  ;;  %v3222_v43 = vmul.f32 %v3075_v40, %v3027_v0 }
 0x22e   : > { %v3078_v46 = vsub.f32 %v3060_v28, %v3077_v41  ;;  %v3151_v47 = vsub.f32 %v3061_v29, %v3150_v42  ;;  %v3223_v48 = vsub.f32 %v3062_v30, %v3222_v43 }
 0x230   : > { %v3080_v51 = vsel %vm3076_vm8, %v3060_v28, %v3078_v46  ;;  %v3153_v52 = vsel %vm3076_vm8, %v3061_v29, %v3151_v47  ;;  %v3225_v54 = vsel %vm3076_vm8, %v3062_v30, %v3223_v48 }
 0x231   : > { %v3081_v56 = vmul.f32 0.8, %v3080_v51  ;;  %v3154_v57 = vmul.f32 0.8, %v3153_v52  ;;  %v3226_v58 = vmul.f32 0.8, %v3225_v54 }
 0x233   : > { %v3082_v59 = vadd.f32 %v3081_v56, %v3079_v49  ;;  %v3155_v60 = vadd.f32 %v3154_v57, %v3152_v50  ;;  %v3227_v61 = vadd.f32 %v3226_v58, %v3224_v53 }
 0x235   : > { %v3084_v62 = vcombine.high %v3082_v59, %v3082_v59  ;;  %v3091_v63 = vrot.slane %v3082_v59, %v3090_v55  ;;  %v3157_v1 = vcombine.high %v3155_v60, %v3155_v60  ;;  %v3164_v2 = vrot.slane %v3155_v60, %v3090_v55 }
 0x236   : > { %v3229_v3 = vcombine.high %v3227_v61, %v3227_v61  ;;  %v3236_v4 = vrot.slane %v3227_v61, %v3090_v55 }
 0x237   : > { %v3098_v5 = vrot.slane %v3084_v62, %v3090_v55  ;;  %v3099_v6 = vcombine.high %v3091_v63, %v3091_v63  ;;  %v3107_v7 = vrot.slane %v3091_v63, %v3090_v55  ;;  %v3171_v8 = vrot.slane %v3157_v1, %v3090_v55 }
 0x238   : > { %v3172_v9 = vcombine.high %v3164_v2, %v3164_v2  ;;  %v3180_v0 = vrot.slane %v3164_v2, %v3090_v55  ;;  %v3243_v10 = vrot.slane %v3229_v3, %v3090_v55  ;;  %v3244_v11 = vcombine.high %v3236_v4, %v3236_v4 }
 0x239   : > { %v3100_v12 = vcombine.high %v3098_v5, %v3098_v5  ;;  %v3114_v13 = vrot.slane %v3098_v5, %v3090_v55  ;;  %v3121_v14 = vrot.slane %v3099_v6, %v3090_v55  ;;  %v3129_v15 = vcombine.high %v3107_v7, %v3107_v7  ;;  %3142 = vst.msk [vmem:[%s4628_s28] sm:$0x1] %vm3141_vm9, %v3107_v7 }
 0x23a   : > { %v3173_v16 = vcombine.high %v3171_v8, %v3171_v8  ;;  %v3187_v17 = vrot.slane %v3171_v8, %v3090_v55  ;;  %v3194_v18 = vrot.slane %v3172_v9, %v3090_v55  ;;  %v3202_v19 = vcombine.high %v3180_v0, %v3180_v0  ;;  %3214 = vst.msk [vmem:[%s4628_s28 + $0x1] sm:$0x1] %vm3141_vm9, %v3180_v0 }
 0x23b   : > { %v3128_v20 = vrot.slane %v3100_v12, %v3090_v55  ;;  %v3130_v21 = vcombine.high %v3114_v13, %v3114_v13  ;;  %v3131_v22 = vcombine.high %v3121_v14, %v3121_v14  ;;  %3143 = vst.msk [vmem:[%s4628_s28 + $0x4] sm:$0x1] %vm3141_vm9, %v3121_v14  ;;  %3144 = vst.msk [vmem:[%s4628_s28 + $0x8] sm:$0x1] %vm3141_vm9, %v3129_v15 }
 0x23c   : > { %3146 = vst.msk [vmem:[%s4628_s28 + $0x10] sm:$0x1] %vm3141_vm9, %v3114_v13  ;;  %v3245_v23 = vcombine.high %v3243_v10, %v3243_v10  ;;  %v3201_v24 = vrot.slane %v3173_v16, %v3090_v55  ;;  %v3203_v25 = vcombine.high %v3187_v17, %v3187_v17  ;;  %v3204_v26 = vcombine.high %v3194_v18, %v3194_v18 }
 0x23d   : > { %3215 = vst.msk [vmem:[%s4628_s28 + $0x5] sm:$0x1] %vm3141_vm9, %v3194_v18  ;;  %3216 = vst.msk [vmem:[%s4628_s28 + $0x9] sm:$0x1] %vm3141_vm9, %v3202_v19  ;;  %v3252_v27 = vrot.slane %v3236_v4, %v3090_v55  ;;  %v3132_v28 = vcombine.high %v3128_v20, %v3128_v20  ;;  %v3259_v29 = vrot.slane %v3243_v10, %v3090_v55 }
 0x23e   : > { %3218 = vst.msk [vmem:[%s4628_s28 + $0x11] sm:$0x1] %vm3141_vm9, %v3187_v17  ;;  %3145 = vst.msk [vmem:[%s4628_s28 + $0xc] sm:$0x1] %vm3141_vm9, %v3131_v22  ;;  %v3266_v30 = vrot.slane %v3244_v11, %v3090_v55  ;;  %v3273_v31 = vrot.slane %v3245_v23, %v3090_v55  ;;  %v3205_v32 = vcombine.high %v3201_v24, %v3201_v24 }
 0x23f   : > { %3147 = vst.msk [vmem:[%s4628_s28 + $0x14] sm:$0x1] %vm3141_vm9, %v3128_v20  ;;  %3148 = vst.msk [vmem:[%s4628_s28 + $0x18] sm:$0x1] %vm3141_vm9, %v3130_v21  ;;  %v3274_v33 = vcombine.high %v3252_v27, %v3252_v27  ;;  %v3275_v34 = vcombine.high %v3259_v29, %v3259_v29 }
 0x240   : > { %3217 = vst.msk [vmem:[%s4628_s28 + $0xd] sm:$0x1] %vm3141_vm9, %v3204_v26  ;;  %3219 = vst.msk [vmem:[%s4628_s28 + $0x15] sm:$0x1] %vm3141_vm9, %v3201_v24  ;;  %v3276_v35 = vcombine.high %v3266_v30, %v3266_v30  ;;  %v3277_v36 = vcombine.high %v3273_v31, %v3273_v31 }
 0x241   : > { %3220 = vst.msk [vmem:[%s4628_s28 + $0x19] sm:$0x1] %vm3141_vm9, %v3203_v25  ;;  %3286 = vst.msk [vmem:[%s4628_s28 + $0x2] sm:$0x1] %vm3141_vm9, %v3252_v27 }
 0x242   : > { %3149 = vst.msk [vmem:[%s4628_s28 + $0x1c] sm:$0x1] %vm3141_vm9, %v3132_v28  ;;  %3287 = vst.msk [vmem:[%s4628_s28 + $0x6] sm:$0x1] %vm3141_vm9, %v3266_v30 }
 0x243   : > { %3290 = vst.msk [vmem:[%s4628_s28 + $0x12] sm:$0x1] %vm3141_vm9, %v3259_v29  ;;  %3291 = vst.msk [vmem:[%s4628_s28 + $0x16] sm:$0x1] %vm3141_vm9, %v3273_v31 }
 0x244   : > { %3221 = vst.msk [vmem:[%s4628_s28 + $0x1d] sm:$0x1] %vm3141_vm9, %v3205_v32  ;;  %3288 = vst.msk [vmem:[%s4628_s28 + $0xa] sm:$0x1] %vm3141_vm9, %v3274_v33 }
 0x245   : > { %3289 = vst.msk [vmem:[%s4628_s28 + $0xe] sm:$0x1] %vm3141_vm9, %v3276_v35  ;;  %3292 = vst.msk [vmem:[%s4628_s28 + $0x1a] sm:$0x1] %vm3141_vm9, %v3275_v34 }
 0x246   : > { %3293 = vst.msk [vmem:[%s4628_s28 + $0x1e] sm:$0x1] %vm3141_vm9, %v3277_v36 }
 0x247   : > { %4042 = shalt.err (!%p4039_p5)
}
 0x248   : > { %s4043_s8 = scalar_lea.hbm %s4665_s7, 512  ;;  %s4047_s26 = scalar_lea.hbm %s4739_s5, 1024 }
 0x249   : > { %p4044_p10 = scmp.ne.s32.totalorder %s4665_s7, %s4043_s8  ;;  %p4048_p3 = scmp.lt.u32.totalorder %s4665_s7, %s4739_s5 }
 0x24a   : > { %p4049_p7 = scmp.lt.u32.totalorder %s4047_s26, %s4043_s8  ;;  %p4051_p11 = scmp.lt.u32.totalorder %s4043_s8, %s4665_s7 }
 0x24b   : > { %p4045_p13 = pnand %p4044_p10, %p4334_p6 }
 0x24c   : > { %p4050_p12 = por %p4049_p7, %p4048_p3 }
 0x24d   : > { %p4046_p9 = pneg %p4045_p13 }
 0x24e   : > { %p4052_p1 = por %p4051_p11, %p4050_p12 }
 0x250   : > { %p4053_p2 = pnand %p4052_p1, %p4046_p9 }
 0x252   : > { %4056 = shalt.err (!%p4053_p2)
}
 0x253   : > { %s4133_s21 = smov 64   ;;  %s4134_s12 = smov 4  }
 0x254   : > { %3787 = dma.vmem_to_hbm [thread:$0]  (%p4334_p6), %s4667_s9, 512, %s4665_s7, %s3295_s11, %s4133_s21, %s4133_s21, %s4134_s12  }
 0x255 PF: > { %s3324_s15 = sand.u32 1, %s4099_s18   ;;  %p4757_p4 = scmp.ne.s32.totalorder %s4747_s29, 0 }
 0x256   : > { %p4758_p8 = scmp.ge.s32.totalorder %s4119_s23, 2  ;;  %s3325_s14 = scalar_lea.sflag [#allocation4], %s3324_s15 }
 0x258   : > { %p3807_p0 = pnand %p4758_p8, %p4757_p4 }
 0x25a   : > { %4094 = dma.done.wait (!%p3807_p0), %s3325_s14, 512  }
 0x25b   : > { %4096 = vsyncadd (!%p3807_p0), %s3325_s14, 4294966784  ;;  %s23_s23 = sadd.s32 1, %s4119_s23   ;;  %s4759_s18 = smov %s4103_s19 }
 0x25c   : > { %p20_p5 = scmp.ge.s32.totalorder %s23_s23, 4   ;;  %s4760_s19 = smov %s4107_s20 }
 0x25d   : > { %s4761_s20 = smov %s4343_s25  ;;  %s4762_s21 = smov %s4115_s22 }
 0x25e   : > { %s4763_s22 = smov %s4765_s24  ;;  %22 = sbr.rel (!%p20_p5) target bundleno = 8 (0x8), region = 101 }
 0x265   :  { %3330 = vsyncpa [#allocation3], 1 }
 0x266   :  { %3332 = vsyncpa [#allocation3 + $0x1], 1 }
 0x267   :  { %3333 = vsyncpa [#allocation6], 1 }
 0x268   :  { %3334 = vsyncpa [#allocation9], 1 }
 0x269   :  { %3335 = vsyncpa [#allocation4], 1 }
 0x26a   :  { %3337 = vsyncpa [#allocation4 + $0x1], 1 }

</bundles_post_ra>
